<compile_context>
chip_gen: v6e
topology: v6e:2x2x1
jax: 0.10.0
libtpu: 0.0.40
codegen_flags: <defaults>
</compile_context>

<pallas_src>
import jax
import jax.numpy as jnp
from jax import lax
from jax.experimental import pallas as pl
from jax.experimental.pallas import tpu as pltpu

EMBED_DIM = 32
DEEP_LAYERS = [128, 64]
NUM_USERS = 1575
NUM_ITEMS = 5751

# Resolved lazily on first forward call: "take" (vectorized in-kernel gather)
# or "loop" (per-row copy fallback).
_GATHER_MODE = None


def _round_up(x, m):
    return (x + m - 1) // m * m


def _pick_tb(batch, block_b):
    """Batch-tile size: multiple of 8; >= 2 tiles for B > 8 (v7x 2-TC split)."""
    block_b = max(8, _round_up(block_b, 8))
    b8 = _round_up(max(batch, 1), 8)
    if b8 <= 8:
        return 8
    if b8 >= 2 * block_b:
        return block_b
    return min(block_b, max(8, _round_up((b8 + 1) // 2, 8)))


def _make_kernel(mode, tb):
    """Build the kernel body.  `mode` selects the embedding-gather impl."""

    def kernel(u_idx_ref, i_idx_ref,          # indices (VMEM tile or SMEM prefetch)
               user_tbl_ref, item_tbl_ref,    # [NU, D], [NI, D] f32 (VMEM-resident)
               wfm_u_ref, wfm_i_ref,          # [1, D] bf16 (fm weight halves)
               w1t_ref, b1_ref,               # [H1, D] bf16, [H1, 1] f32
               w2t_ref, b2_ref,               # [H2, H1] bf16, [H2, 1] f32
               w3_ref, b3_ref,                # [1, H2] bf16, [1, 1] f32 (+ fm bias)
               out_ref,                       # [1, 1, TB] f32
               *scratch):
        f32 = jnp.float32
        bf16 = jnp.bfloat16

        # ---- embedding gather -------------------------------------------
        if mode == "take":
            # Single batched gather per tile from the VMEM-resident tables.
            u_idx = u_idx_ref[0, 0, :]                       # (TB,) int32
            i_idx = i_idx_ref[0, 0, :]
            ue = jnp.take(user_tbl_ref[...], u_idx, axis=0,
                          mode="promise_in_bounds")          # [TB, D] f32
            ie = jnp.take(item_tbl_ref[...], i_idx, axis=0,
                          mode="promise_in_bounds")
        else:
            # Fallback: per-row dynamic-slice copies (always lowers).
            # TODO(synk): if this ever becomes the primary path, switch to
            # 8-row grouped stores (one aligned [8, D] vst per group).
            ue_buf, ie_buf = scratch
            base = pl.program_id(0) * tb

            def gather_row(r, carry):
                u = u_idx_ref[base + r]
                it = i_idx_ref[base + r]
                ue_buf[pl.ds(r, 1), :] = user_tbl_ref[pl.ds(u, 1), :]
                ie_buf[pl.ds(r, 1), :] = item_tbl_ref[pl.ds(it, 1), :]
                return carry

            lax.fori_loop(0, tb, gather_row, 0, unroll=8)
            ue = ue_buf[...]
            ie = ie_buf[...]

        # ---- heads (batch on lanes -> [1, TB] rows, lane-dense) ----------
        nt_dims = (((1,), (1,)), ((), ()))   # contract last dims: A @ B^T
        ue_b = ue.astype(bf16)
        ie_b = ie.astype(bf16)

        # FM linear on cat([ue, ie]):  [1, D] x [TB, D]^T -> [1, TB]
        fm = lax.dot_general(wfm_u_ref[...], ue_b, nt_dims,
                             preferred_element_type=f32)
        fm = fm + lax.dot_general(wfm_i_ref[...], ie_b, nt_dims,
                                  preferred_element_type=f32)

        # Deep path on the element-wise interaction, kept transposed [H, TB].
        inter_b = (ue * ie).astype(bf16)                     # [TB, D]
        h = lax.dot_general(w1t_ref[...], inter_b, nt_dims,
                            preferred_element_type=f32)      # [H1, TB]
        h = jnp.maximum(h + b1_ref[...], 0.0)
        h = jnp.dot(w2t_ref[...], h.astype(bf16),
                    preferred_element_type=f32)              # [H2, TB]
        h = jnp.maximum(h + b2_ref[...], 0.0)
        deep = jnp.dot(w3_ref[...], h.astype(bf16),
                       preferred_element_type=f32)           # [1, TB]

        score = jax.nn.sigmoid(fm + deep + b3_ref[...])      # [1, TB] f32
        out_ref[...] = score[None]                           # [1, 1, TB]

    return kernel


def _forward_call(user_p, item_p, params, tb, mode):
    """Run one pallas_call.  user_p/item_p: padded int32 of length nt*tb."""
    Bp = int(user_p.shape[0])
    nt = Bp // tb
    D = params["user_emb"].shape[1]

    weights = (params["user_emb"], params["item_emb"],
               params["wfm_u"], params["wfm_i"],
               params["w1t"], params["b1"],
               params["w2t"], params["b2"],
               params["w3"], params["b3"])

    kernel = _make_kernel(mode, tb)
    out_shape = jax.ShapeDtypeStruct((nt, 1, tb), jnp.float32)
    cparams = pltpu.CompilerParams(
        dimension_semantics=("parallel",),       # shard batch tiles across TCs
        vmem_limit_bytes=48 * 1024 * 1024,
    )

    if mode == "take":
        res = lambda i: (0, 0)                   # tables / weights stay resident
        idx_spec = pl.BlockSpec((1, 1, tb), lambda i: (i, 0, 0))
        in_specs = [idx_spec, idx_spec] + [pl.BlockSpec(w.shape, res) for w in weights]
        out_specs = pl.BlockSpec((1, 1, tb), lambda i: (i, 0, 0))
        fn = pl.pallas_call(kernel, out_shape=out_shape, grid=(nt,),
                            in_specs=in_specs, out_specs=out_specs,
                            compiler_params=cparams)
        return fn(user_p.reshape(nt, 1, tb), item_p.reshape(nt, 1, tb), *weights)

    # Fallback: indices via scalar prefetch (SMEM), per-row gather into scratch.
    res = lambda i, u, it: (0, 0)
    grid_spec = pltpu.PrefetchScalarGridSpec(
        num_scalar_prefetch=2,
        grid=(nt,),
        in_specs=[pl.BlockSpec(w.shape, res) for w in weights],
        out_specs=pl.BlockSpec((1, 1, tb), lambda i, u, it: (i, 0, 0)),
        scratch_shapes=[pltpu.VMEM((tb, D), jnp.float32),
                        pltpu.VMEM((tb, D), jnp.float32)],
    )
    fn = pl.pallas_call(kernel, out_shape=out_shape, grid_spec=grid_spec,
                        compiler_params=cparams)
    return fn(user_p, item_p, *weights)


def _resolve_gather_mode(params):
    """Pick the gather implementation once: prefer the vectorized jnp.take
    path; fall back to the per-row loop if it fails to lower (or to verify)."""
    key = jax.random.PRNGKey(123)
    b = 16
    u = jax.random.randint(key, (b,), 0, params["user_emb"].shape[0], dtype=jnp.int32)
    it = jax.random.randint(jax.random.fold_in(key, 1), (b,), 0,
                            params["item_emb"].shape[0], dtype=jnp.int32)
    ref = reference_forward(u, it, params)
    for mode in ("take", "loop"):
        try:
            got = jax.block_until_ready(_forward_call(u, it, params, 8, mode))
            got = got.reshape(-1)[:b]
            if bool(jnp.allclose(got, ref, atol=1e-4, rtol=1e-3)):
                return mode
        except Exception:
            continue
    return "loop"


def neural_fm_forward(user, item, params, *, block_b=2048):
    """user, item: int [B].  Returns sigmoid(fm + deep) with shape [B]."""
    global _GATHER_MODE
    B = int(user.shape[0])
    tb = _pick_tb(B, block_b)
    Bp = _round_up(B, tb)
    pad = Bp - B
    # Padded tail rows use index 0 (valid) and are sliced off below.
    user_p = jnp.pad(user.astype(jnp.int32), (0, pad))
    item_p = jnp.pad(item.astype(jnp.int32), (0, pad))

    if _GATHER_MODE is None:
        _GATHER_MODE = _resolve_gather_mode(params)

    out = _forward_call(user_p, item_p, params, tb, _GATHER_MODE)
    return out.reshape(-1)[:B]


def init_params(key, num_users, num_items, embed_dim, deep_layers):
    h1, h2 = deep_layers
    f32 = jnp.float32
    bf16 = jnp.bfloat16
    ks = jax.random.split(key, 8)
    p = {}
    # Embedding tables: f32 (tiny, and keeps the fallback row-gather simple).
    p["user_emb"] = 0.1 * jax.random.normal(ks[0], (num_users, embed_dim), f32)
    p["item_emb"] = 0.1 * jax.random.normal(ks[1], (num_items, embed_dim), f32)

    # fm_layer: Linear(2*D, 1); weight stored as two [1, D] bf16 rows, bias
    # folded into the dnn output bias below.
    wfm = 0.05 * jax.random.normal(ks[2], (2 * embed_dim,), f32)
    p["wfm_u"] = wfm[:embed_dim].reshape(1, embed_dim).astype(bf16)
    p["wfm_i"] = wfm[embed_dim:].reshape(1, embed_dim).astype(bf16)
    bfm = 0.01 * jax.random.normal(ks[3], (1, 1), f32)

    # dnn: Linear(D,128) ReLU, Linear(128,64) ReLU, Linear(64,1).
    # Weights kept in PyTorch's [out, in] layout, bf16; biases f32 columns.
    p["w1t"] = (jax.random.normal(ks[4], (h1, embed_dim), f32)
                / jnp.sqrt(embed_dim)).astype(bf16)
    p["b1"] = jnp.zeros((h1, 1), f32)
    p["w2t"] = (jax.random.normal(ks[5], (h2, h1), f32) / jnp.sqrt(h1)).astype(bf16)
    p["b2"] = jnp.zeros((h2, 1), f32)
    p["w3"] = (jax.random.normal(ks[6], (1, h2), f32) / jnp.sqrt(h2)).astype(bf16)
    b_out = 0.01 * jax.random.normal(ks[7], (1, 1), f32)
    p["b3"] = b_out + bfm
    return p


def reference_forward(user, item, p):
    """Pure-JAX reference mirroring the kernel's mixed precision (bf16 matmul
    operands, f32 accumulation / element-wise math)."""
    f32 = jnp.float32
    rb = lambda x: x.astype(jnp.bfloat16).astype(f32)
    ue = p["user_emb"][user]
    ie = p["item_emb"][item]
    fm = rb(ue) @ p["wfm_u"].astype(f32)[0] + rb(ie) @ p["wfm_i"].astype(f32)[0]
    inter = rb(ue * ie)
    h = jnp.maximum(inter @ p["w1t"].astype(f32).T + p["b1"][:, 0], 0.0)
    h = jnp.maximum(rb(h) @ p["w2t"].astype(f32).T + p["b2"][:, 0], 0.0)
    deep = rb(h) @ p["w3"].astype(f32)[0]
    return jax.nn.sigmoid(fm + deep + p["b3"][0, 0])


if __name__ == "__main__":
    key = jax.random.PRNGKey(0)
    pkey, ukey, ikey = jax.random.split(key, 3)
    params = init_params(pkey, NUM_USERS, NUM_ITEMS, EMBED_DIM, DEEP_LAYERS)

    # Small demo batch.
    B = 8
    user = jax.random.randint(ukey, (B,), 0, NUM_USERS, dtype=jnp.int32)
    item = jax.random.randint(ikey, (B,), 0, NUM_ITEMS, dtype=jnp.int32)
    out = jax.block_until_ready(neural_fm_forward(user, item, params))
    ref = reference_forward(user, item, params)
    assert out.shape == (B,)
    assert jnp.allclose(out, ref, atol=1e-4, rtol=1e-3), (out, ref)

    # Multi-tile grid + ragged tail padding.
    B2 = 40
    u2 = jax.random.randint(jax.random.fold_in(ukey, 1), (B2,), 0, NUM_USERS,
                            dtype=jnp.int32)
    i2 = jax.random.randint(jax.random.fold_in(ikey, 1), (B2,), 0, NUM_ITEMS,
                            dtype=jnp.int32)
    o2 = jax.block_until_ready(neural_fm_forward(u2, i2, params, block_b=16))
    r2 = reference_forward(u2, i2, params)
    assert o2.shape == (B2,)
    assert jnp.allclose(o2, r2, atol=1e-4, rtol=1e-3), (o2, r2)

    print("KERNEL_OK")
</pallas_src>

<mosaic_0001>
module attributes {stable_mosaic.version = 11 : i64} {
  func.func @kernel(%arg0: i32, %arg1: memref<16xi32, #tpu.memory_space<smem>>, %arg2: memref<16xi32, #tpu.memory_space<smem>>, %arg3: memref<1575x32xf32, #tpu.memory_space<vmem>>, %arg4: memref<5751x32xf32, #tpu.memory_space<vmem>>, %arg5: memref<1x32xbf16, #tpu.memory_space<vmem>>, %arg6: memref<1x32xbf16, #tpu.memory_space<vmem>>, %arg7: memref<128x32xbf16, #tpu.memory_space<vmem>>, %arg8: memref<128x1xf32, #tpu.memory_space<vmem>>, %arg9: memref<64x128xbf16, #tpu.memory_space<vmem>>, %arg10: memref<64x1xf32, #tpu.memory_space<vmem>>, %arg11: memref<1x64xbf16, #tpu.memory_space<vmem>>, %arg12: memref<1x1xf32, #tpu.memory_space<vmem>>, %arg13: memref<1x1x8xf32, #tpu.memory_space<vmem>>, %arg14: memref<8x32xf32, #tpu.memory_space<vmem>>, %arg15: memref<8x32xf32, #tpu.memory_space<vmem>>) attributes {dimension_semantics = [#tpu.dimension_semantics<parallel>], iteration_bounds = array<i64: 2>, scalar_prefetch = 2 : i64, scratch_operands = 2 : i64, tpu.core_type = #tpu.core_type<tc>, window_params = [{pipeline_mode = #tpu.pipeline_mode<synchronous>, transform_indices = @transform_0, window_bounds = array<i64: 1575, 32>}, {pipeline_mode = #tpu.pipeline_mode<synchronous>, transform_indices = @transform_1, window_bounds = array<i64: 5751, 32>}, {pipeline_mode = #tpu.pipeline_mode<synchronous>, transform_indices = @transform_2, window_bounds = array<i64: 1, 32>}, {pipeline_mode = #tpu.pipeline_mode<synchronous>, transform_indices = @transform_3, window_bounds = array<i64: 1, 32>}, {pipeline_mode = #tpu.pipeline_mode<synchronous>, transform_indices = @transform_4, window_bounds = array<i64: 128, 32>}, {pipeline_mode = #tpu.pipeline_mode<synchronous>, transform_indices = @transform_5, window_bounds = array<i64: 128, 1>}, {pipeline_mode = #tpu.pipeline_mode<synchronous>, transform_indices = @transform_6, window_bounds = array<i64: 64, 128>}, {pipeline_mode = #tpu.pipeline_mode<synchronous>, transform_indices = @transform_7, window_bounds = array<i64: 64, 1>}, {pipeline_mode = #tpu.pipeline_mode<synchronous>, transform_indices = @transform_8, window_bounds = array<i64: 1, 64>}, {pipeline_mode = #tpu.pipeline_mode<synchronous>, transform_indices = @transform_9, window_bounds = array<i64: 1, 1>}, {transform_indices = @transform_10, window_bounds = array<i64: 1, 1, 8>}]} {
    %c8_i32 = arith.constant 8 : i32
    %0 = arith.muli %arg0, %c8_i32 : i32
    %c0_i32 = arith.constant 0 : i32
    %1 = arith.addi %0, %c0_i32 : i32
    %2 = arith.index_cast %1 : i32 to index
    %3 = memref.load %arg1[%2] : memref<16xi32, #tpu.memory_space<smem>>
    %4 = arith.addi %0, %c0_i32 : i32
    %5 = arith.index_cast %4 : i32 to index
    %6 = memref.load %arg2[%5] : memref<16xi32, #tpu.memory_space<smem>>
    %7 = arith.index_cast %3 : i32 to index
    %c0 = arith.constant 0 : index
    %8 = vector.load %arg3[%7, %c0] : memref<1575x32xf32, #tpu.memory_space<vmem>>, vector<1x32xf32>
    %9 = arith.index_cast %c0_i32 : i32 to index
    %c0_0 = arith.constant 0 : index
    %10 = vector.load %arg14[%9, %c0_0] : memref<8x32xf32, #tpu.memory_space<vmem>>, vector<1x32xf32>
    tpu.vector_store %arg14[%9, %c0_0], %8 {strides = array<i32>} : memref<8x32xf32, #tpu.memory_space<vmem>>, vector<1x32xf32>,
    %11 = arith.index_cast %6 : i32 to index
    %c0_1 = arith.constant 0 : index
    %12 = vector.load %arg4[%11, %c0_1] : memref<5751x32xf32, #tpu.memory_space<vmem>>, vector<1x32xf32>
    %13 = arith.index_cast %c0_i32 : i32 to index
    %c0_2 = arith.constant 0 : index
    %14 = vector.load %arg15[%13, %c0_2] : memref<8x32xf32, #tpu.memory_space<vmem>>, vector<1x32xf32>
    tpu.vector_store %arg15[%13, %c0_2], %12 {strides = array<i32>} : memref<8x32xf32, #tpu.memory_space<vmem>>, vector<1x32xf32>,
    %c1_i32 = arith.constant 1 : i32
    %15 = arith.addi %0, %c1_i32 : i32
    %16 = arith.index_cast %15 : i32 to index
    %17 = memref.load %arg1[%16] : memref<16xi32, #tpu.memory_space<smem>>
    %18 = arith.addi %0, %c1_i32 : i32
    %19 = arith.index_cast %18 : i32 to index
    %20 = memref.load %arg2[%19] : memref<16xi32, #tpu.memory_space<smem>>
    %21 = arith.index_cast %17 : i32 to index
    %c0_3 = arith.constant 0 : index
    %22 = vector.load %arg3[%21, %c0_3] : memref<1575x32xf32, #tpu.memory_space<vmem>>, vector<1x32xf32>
    %23 = arith.index_cast %c1_i32 : i32 to index
    %c0_4 = arith.constant 0 : index
    %24 = vector.load %arg14[%23, %c0_4] : memref<8x32xf32, #tpu.memory_space<vmem>>, vector<1x32xf32>
    tpu.vector_store %arg14[%23, %c0_4], %22 {strides = array<i32>} : memref<8x32xf32, #tpu.memory_space<vmem>>, vector<1x32xf32>,
    %25 = arith.index_cast %20 : i32 to index
    %c0_5 = arith.constant 0 : index
    %26 = vector.load %arg4[%25, %c0_5] : memref<5751x32xf32, #tpu.memory_space<vmem>>, vector<1x32xf32>
    %27 = arith.index_cast %c1_i32 : i32 to index
    %c0_6 = arith.constant 0 : index
    %28 = vector.load %arg15[%27, %c0_6] : memref<8x32xf32, #tpu.memory_space<vmem>>, vector<1x32xf32>
    tpu.vector_store %arg15[%27, %c0_6], %26 {strides = array<i32>} : memref<8x32xf32, #tpu.memory_space<vmem>>, vector<1x32xf32>,
    %c2_i32 = arith.constant 2 : i32
    %29 = arith.addi %0, %c2_i32 : i32
    %30 = arith.index_cast %29 : i32 to index
    %31 = memref.load %arg1[%30] : memref<16xi32, #tpu.memory_space<smem>>
    %32 = arith.addi %0, %c2_i32 : i32
    %33 = arith.index_cast %32 : i32 to index
    %34 = memref.load %arg2[%33] : memref<16xi32, #tpu.memory_space<smem>>
    %35 = arith.index_cast %31 : i32 to index
    %c0_7 = arith.constant 0 : index
    %36 = vector.load %arg3[%35, %c0_7] : memref<1575x32xf32, #tpu.memory_space<vmem>>, vector<1x32xf32>
    %37 = arith.index_cast %c2_i32 : i32 to index
    %c0_8 = arith.constant 0 : index
    %38 = vector.load %arg14[%37, %c0_8] : memref<8x32xf32, #tpu.memory_space<vmem>>, vector<1x32xf32>
    tpu.vector_store %arg14[%37, %c0_8], %36 {strides = array<i32>} : memref<8x32xf32, #tpu.memory_space<vmem>>, vector<1x32xf32>,
    %39 = arith.index_cast %34 : i32 to index
    %c0_9 = arith.constant 0 : index
    %40 = vector.load %arg4[%39, %c0_9] : memref<5751x32xf32, #tpu.memory_space<vmem>>, vector<1x32xf32>
    %41 = arith.index_cast %c2_i32 : i32 to index
    %c0_10 = arith.constant 0 : index
    %42 = vector.load %arg15[%41, %c0_10] : memref<8x32xf32, #tpu.memory_space<vmem>>, vector<1x32xf32>
    tpu.vector_store %arg15[%41, %c0_10], %40 {strides = array<i32>} : memref<8x32xf32, #tpu.memory_space<vmem>>, vector<1x32xf32>,
    %c3_i32 = arith.constant 3 : i32
    %43 = arith.addi %0, %c3_i32 : i32
    %44 = arith.index_cast %43 : i32 to index
    %45 = memref.load %arg1[%44] : memref<16xi32, #tpu.memory_space<smem>>
    %46 = arith.addi %0, %c3_i32 : i32
    %47 = arith.index_cast %46 : i32 to index
    %48 = memref.load %arg2[%47] : memref<16xi32, #tpu.memory_space<smem>>
    %49 = arith.index_cast %45 : i32 to index
    %c0_11 = arith.constant 0 : index
    %50 = vector.load %arg3[%49, %c0_11] : memref<1575x32xf32, #tpu.memory_space<vmem>>, vector<1x32xf32>
    %51 = arith.index_cast %c3_i32 : i32 to index
    %c0_12 = arith.constant 0 : index
    %52 = vector.load %arg14[%51, %c0_12] : memref<8x32xf32, #tpu.memory_space<vmem>>, vector<1x32xf32>
    tpu.vector_store %arg14[%51, %c0_12], %50 {strides = array<i32>} : memref<8x32xf32, #tpu.memory_space<vmem>>, vector<1x32xf32>,
    %53 = arith.index_cast %48 : i32 to index
    %c0_13 = arith.constant 0 : index
    %54 = vector.load %arg4[%53, %c0_13] : memref<5751x32xf32, #tpu.memory_space<vmem>>, vector<1x32xf32>
    %55 = arith.index_cast %c3_i32 : i32 to index
    %c0_14 = arith.constant 0 : index
    %56 = vector.load %arg15[%55, %c0_14] : memref<8x32xf32, #tpu.memory_space<vmem>>, vector<1x32xf32>
    tpu.vector_store %arg15[%55, %c0_14], %54 {strides = array<i32>} : memref<8x32xf32, #tpu.memory_space<vmem>>, vector<1x32xf32>,
    %c4_i32 = arith.constant 4 : i32
    %57 = arith.addi %0, %c4_i32 : i32
    %58 = arith.index_cast %57 : i32 to index
    %59 = memref.load %arg1[%58] : memref<16xi32, #tpu.memory_space<smem>>
    %60 = arith.addi %0, %c4_i32 : i32
    %61 = arith.index_cast %60 : i32 to index
    %62 = memref.load %arg2[%61] : memref<16xi32, #tpu.memory_space<smem>>
    %63 = arith.index_cast %59 : i32 to index
    %c0_15 = arith.constant 0 : index
    %64 = vector.load %arg3[%63, %c0_15] : memref<1575x32xf32, #tpu.memory_space<vmem>>, vector<1x32xf32>
    %65 = arith.index_cast %c4_i32 : i32 to index
    %c0_16 = arith.constant 0 : index
    %66 = vector.load %arg14[%65, %c0_16] : memref<8x32xf32, #tpu.memory_space<vmem>>, vector<1x32xf32>
    tpu.vector_store %arg14[%65, %c0_16], %64 {strides = array<i32>} : memref<8x32xf32, #tpu.memory_space<vmem>>, vector<1x32xf32>,
    %67 = arith.index_cast %62 : i32 to index
    %c0_17 = arith.constant 0 : index
    %68 = vector.load %arg4[%67, %c0_17] : memref<5751x32xf32, #tpu.memory_space<vmem>>, vector<1x32xf32>
    %69 = arith.index_cast %c4_i32 : i32 to index
    %c0_18 = arith.constant 0 : index
    %70 = vector.load %arg15[%69, %c0_18] : memref<8x32xf32, #tpu.memory_space<vmem>>, vector<1x32xf32>
    tpu.vector_store %arg15[%69, %c0_18], %68 {strides = array<i32>} : memref<8x32xf32, #tpu.memory_space<vmem>>, vector<1x32xf32>,
    %c5_i32 = arith.constant 5 : i32
    %71 = arith.addi %0, %c5_i32 : i32
    %72 = arith.index_cast %71 : i32 to index
    %73 = memref.load %arg1[%72] : memref<16xi32, #tpu.memory_space<smem>>
    %74 = arith.addi %0, %c5_i32 : i32
    %75 = arith.index_cast %74 : i32 to index
    %76 = memref.load %arg2[%75] : memref<16xi32, #tpu.memory_space<smem>>
    %77 = arith.index_cast %73 : i32 to index
    %c0_19 = arith.constant 0 : index
    %78 = vector.load %arg3[%77, %c0_19] : memref<1575x32xf32, #tpu.memory_space<vmem>>, vector<1x32xf32>
    %79 = arith.index_cast %c5_i32 : i32 to index
    %c0_20 = arith.constant 0 : index
    %80 = vector.load %arg14[%79, %c0_20] : memref<8x32xf32, #tpu.memory_space<vmem>>, vector<1x32xf32>
    tpu.vector_store %arg14[%79, %c0_20], %78 {strides = array<i32>} : memref<8x32xf32, #tpu.memory_space<vmem>>, vector<1x32xf32>,
    %81 = arith.index_cast %76 : i32 to index
    %c0_21 = arith.constant 0 : index
    %82 = vector.load %arg4[%81, %c0_21] : memref<5751x32xf32, #tpu.memory_space<vmem>>, vector<1x32xf32>
    %83 = arith.index_cast %c5_i32 : i32 to index
    %c0_22 = arith.constant 0 : index
    %84 = vector.load %arg15[%83, %c0_22] : memref<8x32xf32, #tpu.memory_space<vmem>>, vector<1x32xf32>
    tpu.vector_store %arg15[%83, %c0_22], %82 {strides = array<i32>} : memref<8x32xf32, #tpu.memory_space<vmem>>, vector<1x32xf32>,
    %c6_i32 = arith.constant 6 : i32
    %85 = arith.addi %0, %c6_i32 : i32
    %86 = arith.index_cast %85 : i32 to index
    %87 = memref.load %arg1[%86] : memref<16xi32, #tpu.memory_space<smem>>
    %88 = arith.addi %0, %c6_i32 : i32
    %89 = arith.index_cast %88 : i32 to index
    %90 = memref.load %arg2[%89] : memref<16xi32, #tpu.memory_space<smem>>
    %91 = arith.index_cast %87 : i32 to index
    %c0_23 = arith.constant 0 : index
    %92 = vector.load %arg3[%91, %c0_23] : memref<1575x32xf32, #tpu.memory_space<vmem>>, vector<1x32xf32>
    %93 = arith.index_cast %c6_i32 : i32 to index
    %c0_24 = arith.constant 0 : index
    %94 = vector.load %arg14[%93, %c0_24] : memref<8x32xf32, #tpu.memory_space<vmem>>, vector<1x32xf32>
    tpu.vector_store %arg14[%93, %c0_24], %92 {strides = array<i32>} : memref<8x32xf32, #tpu.memory_space<vmem>>, vector<1x32xf32>,
    %95 = arith.index_cast %90 : i32 to index
    %c0_25 = arith.constant 0 : index
    %96 = vector.load %arg4[%95, %c0_25] : memref<5751x32xf32, #tpu.memory_space<vmem>>, vector<1x32xf32>
    %97 = arith.index_cast %c6_i32 : i32 to index
    %c0_26 = arith.constant 0 : index
    %98 = vector.load %arg15[%97, %c0_26] : memref<8x32xf32, #tpu.memory_space<vmem>>, vector<1x32xf32>
    tpu.vector_store %arg15[%97, %c0_26], %96 {strides = array<i32>} : memref<8x32xf32, #tpu.memory_space<vmem>>, vector<1x32xf32>,
    %c7_i32 = arith.constant 7 : i32
    %99 = arith.addi %0, %c7_i32 : i32
    %100 = arith.index_cast %99 : i32 to index
    %101 = memref.load %arg1[%100] : memref<16xi32, #tpu.memory_space<smem>>
    %102 = arith.addi %0, %c7_i32 : i32
    %103 = arith.index_cast %102 : i32 to index
    %104 = memref.load %arg2[%103] : memref<16xi32, #tpu.memory_space<smem>>
    %105 = arith.index_cast %101 : i32 to index
    %c0_27 = arith.constant 0 : index
    %106 = vector.load %arg3[%105, %c0_27] : memref<1575x32xf32, #tpu.memory_space<vmem>>, vector<1x32xf32>
    %107 = arith.index_cast %c7_i32 : i32 to index
    %c0_28 = arith.constant 0 : index
    %108 = vector.load %arg14[%107, %c0_28] : memref<8x32xf32, #tpu.memory_space<vmem>>, vector<1x32xf32>
    tpu.vector_store %arg14[%107, %c0_28], %106 {strides = array<i32>} : memref<8x32xf32, #tpu.memory_space<vmem>>, vector<1x32xf32>,
    %109 = arith.index_cast %104 : i32 to index
    %c0_29 = arith.constant 0 : index
    %110 = vector.load %arg4[%109, %c0_29] : memref<5751x32xf32, #tpu.memory_space<vmem>>, vector<1x32xf32>
    %111 = arith.index_cast %c7_i32 : i32 to index
    %c0_30 = arith.constant 0 : index
    %112 = vector.load %arg15[%111, %c0_30] : memref<8x32xf32, #tpu.memory_space<vmem>>, vector<1x32xf32>
    tpu.vector_store %arg15[%111, %c0_30], %110 {strides = array<i32>} : memref<8x32xf32, #tpu.memory_space<vmem>>, vector<1x32xf32>,
    %c8_i32_31 = arith.constant 8 : i32
    %c0_32 = arith.constant 0 : index
    %c0_33 = arith.constant 0 : index
    %113 = vector.load %arg14[%c0_32, %c0_33] : memref<8x32xf32, #tpu.memory_space<vmem>>, vector<8x32xf32>
    %c0_34 = arith.constant 0 : index
    %c0_35 = arith.constant 0 : index
    %114 = vector.load %arg15[%c0_34, %c0_35] : memref<8x32xf32, #tpu.memory_space<vmem>>, vector<8x32xf32>
    %115 = arith.truncf %113 : vector<8x32xf32> to vector<8x32xbf16>
    %116 = arith.truncf %114 : vector<8x32xf32> to vector<8x32xbf16>
    %c0_36 = arith.constant 0 : index
    %c0_37 = arith.constant 0 : index
    %117 = vector.load %arg5[%c0_36, %c0_37] : memref<1x32xbf16, #tpu.memory_space<vmem>>, vector<1x32xbf16>
    %cst = arith.constant dense<0.000000e+00> : vector<1x8xf32>
    %118 = tpu.matmul %117, %115, %cst {dimension_numbers = #tpu.dot_dimension_numbers<[1], [1], [0], [0], [0, 0, 1, 0], [], []>} : vector<1x32xbf16>, vector<8x32xbf16>, vector<1x8xf32> -> vector<1x8xf32>
    %c0_38 = arith.constant 0 : index
    %c0_39 = arith.constant 0 : index
    %119 = vector.load %arg6[%c0_38, %c0_39] : memref<1x32xbf16, #tpu.memory_space<vmem>>, vector<1x32xbf16>
    %cst_40 = arith.constant dense<0.000000e+00> : vector<1x8xf32>
    %120 = tpu.matmul %119, %116, %cst_40 {dimension_numbers = #tpu.dot_dimension_numbers<[1], [1], [0], [0], [0, 0, 1, 0], [], []>} : vector<1x32xbf16>, vector<8x32xbf16>, vector<1x8xf32> -> vector<1x8xf32>
    %121 = arith.addf %118, %120 : vector<1x8xf32>
    %122 = arith.mulf %113, %114 : vector<8x32xf32>
    %123 = arith.truncf %122 : vector<8x32xf32> to vector<8x32xbf16>
    %c0_41 = arith.constant 0 : index
    %c0_42 = arith.constant 0 : index
    %124 = vector.load %arg7[%c0_41, %c0_42] : memref<128x32xbf16, #tpu.memory_space<vmem>>, vector<128x32xbf16>
    %cst_43 = arith.constant dense<0.000000e+00> : vector<128x8xf32>
    %125 = tpu.matmul %124, %123, %cst_43 {dimension_numbers = #tpu.dot_dimension_numbers<[1], [1], [0], [0], [0, 0, 1, 0], [], []>} : vector<128x32xbf16>, vector<8x32xbf16>, vector<128x8xf32> -> vector<128x8xf32>
    %c0_44 = arith.constant 0 : index
    %c0_45 = arith.constant 0 : index
    %126 = vector.load %arg8[%c0_44, %c0_45] : memref<128x1xf32, #tpu.memory_space<vmem>>, vector<128x1xf32>
    %127 = vector.broadcast %126 : vector<128x1xf32> to vector<128x8xf32>
    %128 = arith.addf %125, %127 : vector<128x8xf32>
    %cst_46 = arith.constant 0.000000e+00 : f32
    %129 = vector.broadcast %cst_46 : f32 to vector<128x8xf32>
    %130 = arith.maximumf %128, %129 : vector<128x8xf32>
    %c0_47 = arith.constant 0 : index
    %c0_48 = arith.constant 0 : index
    %131 = vector.load %arg9[%c0_47, %c0_48] : memref<64x128xbf16, #tpu.memory_space<vmem>>, vector<64x128xbf16>
    %132 = arith.truncf %130 : vector<128x8xf32> to vector<128x8xbf16>
    %cst_49 = arith.constant dense<0.000000e+00> : vector<64x8xf32>
    %133 = tpu.matmul %131, %132, %cst_49 {dimension_numbers = #tpu.dot_dimension_numbers<[1], [0], [0], [1], [0, 0, 1, 1], [], []>} : vector<64x128xbf16>, vector<128x8xbf16>, vector<64x8xf32> -> vector<64x8xf32>
    %c0_50 = arith.constant 0 : index
    %c0_51 = arith.constant 0 : index
    %134 = vector.load %arg10[%c0_50, %c0_51] : memref<64x1xf32, #tpu.memory_space<vmem>>, vector<64x1xf32>
    %135 = vector.broadcast %134 : vector<64x1xf32> to vector<64x8xf32>
    %136 = arith.addf %133, %135 : vector<64x8xf32>
    %cst_52 = arith.constant 0.000000e+00 : f32
    %137 = vector.broadcast %cst_52 : f32 to vector<64x8xf32>
    %138 = arith.maximumf %136, %137 : vector<64x8xf32>
    %c0_53 = arith.constant 0 : index
    %c0_54 = arith.constant 0 : index
    %139 = vector.load %arg11[%c0_53, %c0_54] : memref<1x64xbf16, #tpu.memory_space<vmem>>, vector<1x64xbf16>
    %140 = arith.truncf %138 : vector<64x8xf32> to vector<64x8xbf16>
    %cst_55 = arith.constant dense<0.000000e+00> : vector<1x8xf32>
    %141 = tpu.matmul %139, %140, %cst_55 {dimension_numbers = #tpu.dot_dimension_numbers<[1], [0], [0], [1], [0, 0, 1, 1], [], []>} : vector<1x64xbf16>, vector<64x8xbf16>, vector<1x8xf32> -> vector<1x8xf32>
    %142 = arith.addf %121, %141 : vector<1x8xf32>
    %c0_56 = arith.constant 0 : index
    %c0_57 = arith.constant 0 : index
    %143 = vector.load %arg12[%c0_56, %c0_57] : memref<1x1xf32, #tpu.memory_space<vmem>>, vector<1x1xf32>
    %144 = vector.broadcast %143 : vector<1x1xf32> to vector<1x8xf32>
    %145 = arith.addf %142, %144 : vector<1x8xf32>
    %146 = arith.negf %145 : vector<1x8xf32>
    %147 = math.exp %146 : vector<1x8xf32>
    %cst_58 = arith.constant 1.000000e+00 : f32
    %148 = vector.broadcast %cst_58 : f32 to vector<1x8xf32>
    %149 = arith.addf %148, %147 : vector<1x8xf32>
    %150 = arith.divf %148, %149 : vector<1x8xf32>
    %151 = vector.shape_cast %150 : vector<1x8xf32> to vector<1x1x8xf32>
    %c0_59 = arith.constant 0 : index
    %c0_60 = arith.constant 0 : index
    %c0_61 = arith.constant 0 : index
    %152 = vector.load %arg13[%c0_59, %c0_60, %c0_61] : memref<1x1x8xf32, #tpu.memory_space<vmem>>, vector<1x1x8xf32>
    tpu.vector_store %arg13[%c0_59, %c0_60, %c0_61], %151 {strides = array<i32>} : memref<1x1x8xf32, #tpu.memory_space<vmem>>, vector<1x1x8xf32>,
    return
  }
  func.func @transform_0(%arg0: i32, %arg1: memref<16xi32, #tpu.memory_space<smem>>, %arg2: memref<16xi32, #tpu.memory_space<smem>>) -> (i32, i32) {
    %c0_i32 = arith.constant 0 : i32
    %c0_i32_0 = arith.constant 0 : i32
    %c0_i32_1 = arith.constant 0 : i32
    return %c0_i32, %c0_i32_0 : i32, i32
  }
  func.func @transform_1(%arg0: i32, %arg1: memref<16xi32, #tpu.memory_space<smem>>, %arg2: memref<16xi32, #tpu.memory_space<smem>>) -> (i32, i32) {
    %c0_i32 = arith.constant 0 : i32
    %c0_i32_0 = arith.constant 0 : i32
    %c0_i32_1 = arith.constant 0 : i32
    return %c0_i32, %c0_i32_0 : i32, i32
  }
  func.func @transform_2(%arg0: i32, %arg1: memref<16xi32, #tpu.memory_space<smem>>, %arg2: memref<16xi32, #tpu.memory_space<smem>>) -> (i32, i32) {
    %c0_i32 = arith.constant 0 : i32
    %c0_i32_0 = arith.constant 0 : i32
    %c0_i32_1 = arith.constant 0 : i32
    return %c0_i32, %c0_i32_0 : i32, i32
  }
  func.func @transform_3(%arg0: i32, %arg1: memref<16xi32, #tpu.memory_space<smem>>, %arg2: memref<16xi32, #tpu.memory_space<smem>>) -> (i32, i32) {
    %c0_i32 = arith.constant 0 : i32
    %c0_i32_0 = arith.constant 0 : i32
    %c0_i32_1 = arith.constant 0 : i32
    return %c0_i32, %c0_i32_0 : i32, i32
  }
  func.func @transform_4(%arg0: i32, %arg1: memref<16xi32, #tpu.memory_space<smem>>, %arg2: memref<16xi32, #tpu.memory_space<smem>>) -> (i32, i32) {
    %c0_i32 = arith.constant 0 : i32
    %c0_i32_0 = arith.constant 0 : i32
    %c0_i32_1 = arith.constant 0 : i32
    return %c0_i32, %c0_i32_0 : i32, i32
  }
  func.func @transform_5(%arg0: i32, %arg1: memref<16xi32, #tpu.memory_space<smem>>, %arg2: memref<16xi32, #tpu.memory_space<smem>>) -> (i32, i32) {
    %c0_i32 = arith.constant 0 : i32
    %c0_i32_0 = arith.constant 0 : i32
    %c0_i32_1 = arith.constant 0 : i32
    return %c0_i32, %c0_i32_0 : i32, i32
  }
  func.func @transform_6(%arg0: i32, %arg1: memref<16xi32, #tpu.memory_space<smem>>, %arg2: memref<16xi32, #tpu.memory_space<smem>>) -> (i32, i32) {
    %c0_i32 = arith.constant 0 : i32
    %c0_i32_0 = arith.constant 0 : i32
    %c0_i32_1 = arith.constant 0 : i32
    return %c0_i32, %c0_i32_0 : i32, i32
  }
  func.func @transform_7(%arg0: i32, %arg1: memref<16xi32, #tpu.memory_space<smem>>, %arg2: memref<16xi32, #tpu.memory_space<smem>>) -> (i32, i32) {
    %c0_i32 = arith.constant 0 : i32
    %c0_i32_0 = arith.constant 0 : i32
    %c0_i32_1 = arith.constant 0 : i32
    return %c0_i32, %c0_i32_0 : i32, i32
  }
  func.func @transform_8(%arg0: i32, %arg1: memref<16xi32, #tpu.memory_space<smem>>, %arg2: memref<16xi32, #tpu.memory_space<smem>>) -> (i32, i32) {
    %c0_i32 = arith.constant 0 : i32
    %c0_i32_0 = arith.constant 0 : i32
    %c0_i32_1 = arith.constant 0 : i32
    return %c0_i32, %c0_i32_0 : i32, i32
  }
  func.func @transform_9(%arg0: i32, %arg1: memref<16xi32, #tpu.memory_space<smem>>, %arg2: memref<16xi32, #tpu.memory_space<smem>>) -> (i32, i32) {
    %c0_i32 = arith.constant 0 : i32
    %c0_i32_0 = arith.constant 0 : i32
    %c0_i32_1 = arith.constant 0 : i32
    return %c0_i32, %c0_i32_0 : i32, i32
  }
  func.func @transform_10(%arg0: i32, %arg1: memref<16xi32, #tpu.memory_space<smem>>, %arg2: memref<16xi32, #tpu.memory_space<smem>>) -> (i32, i32, i32) {
    %c0_i32 = arith.constant 0 : i32
    %c0_i32_0 = arith.constant 0 : i32
    %c0_i32_1 = arith.constant 0 : i32
    return %arg0, %c0_i32, %c0_i32_0 : i32, i32, i32
  }
}

module attributes {stable_mosaic.version = 11 : i64} {
  func.func @kernel(%arg0: i32, %arg1: memref<8xi32, #tpu.memory_space<smem>>, %arg2: memref<8xi32, #tpu.memory_space<smem>>, %arg3: memref<1575x32xf32, #tpu.memory_space<vmem>>, %arg4: memref<5751x32xf32, #tpu.memory_space<vmem>>, %arg5: memref<1x32xbf16, #tpu.memory_space<vmem>>, %arg6: memref<1x32xbf16, #tpu.memory_space<vmem>>, %arg7: memref<128x32xbf16, #tpu.memory_space<vmem>>, %arg8: memref<128x1xf32, #tpu.memory_space<vmem>>, %arg9: memref<64x128xbf16, #tpu.memory_space<vmem>>, %arg10: memref<64x1xf32, #tpu.memory_space<vmem>>, %arg11: memref<1x64xbf16, #tpu.memory_space<vmem>>, %arg12: memref<1x1xf32, #tpu.memory_space<vmem>>, %arg13: memref<1x1x8xf32, #tpu.memory_space<vmem>>, %arg14: memref<8x32xf32, #tpu.memory_space<vmem>>, %arg15: memref<8x32xf32, #tpu.memory_space<vmem>>) attributes {dimension_semantics = [#tpu.dimension_semantics<parallel>], iteration_bounds = array<i64: 1>, scalar_prefetch = 2 : i64, scratch_operands = 2 : i64, tpu.core_type = #tpu.core_type<tc>, window_params = [{pipeline_mode = #tpu.pipeline_mode<synchronous>, transform_indices = @transform_0, window_bounds = array<i64: 1575, 32>}, {pipeline_mode = #tpu.pipeline_mode<synchronous>, transform_indices = @transform_1, window_bounds = array<i64: 5751, 32>}, {pipeline_mode = #tpu.pipeline_mode<synchronous>, transform_indices = @transform_2, window_bounds = array<i64: 1, 32>}, {pipeline_mode = #tpu.pipeline_mode<synchronous>, transform_indices = @transform_3, window_bounds = array<i64: 1, 32>}, {pipeline_mode = #tpu.pipeline_mode<synchronous>, transform_indices = @transform_4, window_bounds = array<i64: 128, 32>}, {pipeline_mode = #tpu.pipeline_mode<synchronous>, transform_indices = @transform_5, window_bounds = array<i64: 128, 1>}, {pipeline_mode = #tpu.pipeline_mode<synchronous>, transform_indices = @transform_6, window_bounds = array<i64: 64, 128>}, {pipeline_mode = #tpu.pipeline_mode<synchronous>, transform_indices = @transform_7, window_bounds = array<i64: 64, 1>}, {pipeline_mode = #tpu.pipeline_mode<synchronous>, transform_indices = @transform_8, window_bounds = array<i64: 1, 64>}, {pipeline_mode = #tpu.pipeline_mode<synchronous>, transform_indices = @transform_9, window_bounds = array<i64: 1, 1>}, {transform_indices = @transform_10, window_bounds = array<i64: 1, 1, 8>}]} {
    %c8_i32 = arith.constant 8 : i32
    %0 = arith.muli %arg0, %c8_i32 : i32
    %c0_i32 = arith.constant 0 : i32
    %1 = arith.addi %0, %c0_i32 : i32
    %2 = arith.index_cast %1 : i32 to index
    %3 = memref.load %arg1[%2] : memref<8xi32, #tpu.memory_space<smem>>
    %4 = arith.addi %0, %c0_i32 : i32
    %5 = arith.index_cast %4 : i32 to index
    %6 = memref.load %arg2[%5] : memref<8xi32, #tpu.memory_space<smem>>
    %7 = arith.index_cast %3 : i32 to index
    %c0 = arith.constant 0 : index
    %8 = vector.load %arg3[%7, %c0] : memref<1575x32xf32, #tpu.memory_space<vmem>>, vector<1x32xf32>
    %9 = arith.index_cast %c0_i32 : i32 to index
    %c0_0 = arith.constant 0 : index
    %10 = vector.load %arg14[%9, %c0_0] : memref<8x32xf32, #tpu.memory_space<vmem>>, vector<1x32xf32>
    tpu.vector_store %arg14[%9, %c0_0], %8 {strides = array<i32>} : memref<8x32xf32, #tpu.memory_space<vmem>>, vector<1x32xf32>,
    %11 = arith.index_cast %6 : i32 to index
    %c0_1 = arith.constant 0 : index
    %12 = vector.load %arg4[%11, %c0_1] : memref<5751x32xf32, #tpu.memory_space<vmem>>, vector<1x32xf32>
    %13 = arith.index_cast %c0_i32 : i32 to index
    %c0_2 = arith.constant 0 : index
    %14 = vector.load %arg15[%13, %c0_2] : memref<8x32xf32, #tpu.memory_space<vmem>>, vector<1x32xf32>
    tpu.vector_store %arg15[%13, %c0_2], %12 {strides = array<i32>} : memref<8x32xf32, #tpu.memory_space<vmem>>, vector<1x32xf32>,
    %c1_i32 = arith.constant 1 : i32
    %15 = arith.addi %0, %c1_i32 : i32
    %16 = arith.index_cast %15 : i32 to index
    %17 = memref.load %arg1[%16] : memref<8xi32, #tpu.memory_space<smem>>
    %18 = arith.addi %0, %c1_i32 : i32
    %19 = arith.index_cast %18 : i32 to index
    %20 = memref.load %arg2[%19] : memref<8xi32, #tpu.memory_space<smem>>
    %21 = arith.index_cast %17 : i32 to index
    %c0_3 = arith.constant 0 : index
    %22 = vector.load %arg3[%21, %c0_3] : memref<1575x32xf32, #tpu.memory_space<vmem>>, vector<1x32xf32>
    %23 = arith.index_cast %c1_i32 : i32 to index
    %c0_4 = arith.constant 0 : index
    %24 = vector.load %arg14[%23, %c0_4] : memref<8x32xf32, #tpu.memory_space<vmem>>, vector<1x32xf32>
    tpu.vector_store %arg14[%23, %c0_4], %22 {strides = array<i32>} : memref<8x32xf32, #tpu.memory_space<vmem>>, vector<1x32xf32>,
    %25 = arith.index_cast %20 : i32 to index
    %c0_5 = arith.constant 0 : index
    %26 = vector.load %arg4[%25, %c0_5] : memref<5751x32xf32, #tpu.memory_space<vmem>>, vector<1x32xf32>
    %27 = arith.index_cast %c1_i32 : i32 to index
    %c0_6 = arith.constant 0 : index
    %28 = vector.load %arg15[%27, %c0_6] : memref<8x32xf32, #tpu.memory_space<vmem>>, vector<1x32xf32>
    tpu.vector_store %arg15[%27, %c0_6], %26 {strides = array<i32>} : memref<8x32xf32, #tpu.memory_space<vmem>>, vector<1x32xf32>,
    %c2_i32 = arith.constant 2 : i32
    %29 = arith.addi %0, %c2_i32 : i32
    %30 = arith.index_cast %29 : i32 to index
    %31 = memref.load %arg1[%30] : memref<8xi32, #tpu.memory_space<smem>>
    %32 = arith.addi %0, %c2_i32 : i32
    %33 = arith.index_cast %32 : i32 to index
    %34 = memref.load %arg2[%33] : memref<8xi32, #tpu.memory_space<smem>>
    %35 = arith.index_cast %31 : i32 to index
    %c0_7 = arith.constant 0 : index
    %36 = vector.load %arg3[%35, %c0_7] : memref<1575x32xf32, #tpu.memory_space<vmem>>, vector<1x32xf32>
    %37 = arith.index_cast %c2_i32 : i32 to index
    %c0_8 = arith.constant 0 : index
    %38 = vector.load %arg14[%37, %c0_8] : memref<8x32xf32, #tpu.memory_space<vmem>>, vector<1x32xf32>
    tpu.vector_store %arg14[%37, %c0_8], %36 {strides = array<i32>} : memref<8x32xf32, #tpu.memory_space<vmem>>, vector<1x32xf32>,
    %39 = arith.index_cast %34 : i32 to index
    %c0_9 = arith.constant 0 : index
    %40 = vector.load %arg4[%39, %c0_9] : memref<5751x32xf32, #tpu.memory_space<vmem>>, vector<1x32xf32>
    %41 = arith.index_cast %c2_i32 : i32 to index
    %c0_10 = arith.constant 0 : index
    %42 = vector.load %arg15[%41, %c0_10] : memref<8x32xf32, #tpu.memory_space<vmem>>, vector<1x32xf32>
    tpu.vector_store %arg15[%41, %c0_10], %40 {strides = array<i32>} : memref<8x32xf32, #tpu.memory_space<vmem>>, vector<1x32xf32>,
    %c3_i32 = arith.constant 3 : i32
    %43 = arith.addi %0, %c3_i32 : i32
    %44 = arith.index_cast %43 : i32 to index
    %45 = memref.load %arg1[%44] : memref<8xi32, #tpu.memory_space<smem>>
    %46 = arith.addi %0, %c3_i32 : i32
    %47 = arith.index_cast %46 : i32 to index
    %48 = memref.load %arg2[%47] : memref<8xi32, #tpu.memory_space<smem>>
    %49 = arith.index_cast %45 : i32 to index
    %c0_11 = arith.constant 0 : index
    %50 = vector.load %arg3[%49, %c0_11] : memref<1575x32xf32, #tpu.memory_space<vmem>>, vector<1x32xf32>
    %51 = arith.index_cast %c3_i32 : i32 to index
    %c0_12 = arith.constant 0 : index
    %52 = vector.load %arg14[%51, %c0_12] : memref<8x32xf32, #tpu.memory_space<vmem>>, vector<1x32xf32>
    tpu.vector_store %arg14[%51, %c0_12], %50 {strides = array<i32>} : memref<8x32xf32, #tpu.memory_space<vmem>>, vector<1x32xf32>,
    %53 = arith.index_cast %48 : i32 to index
    %c0_13 = arith.constant 0 : index
    %54 = vector.load %arg4[%53, %c0_13] : memref<5751x32xf32, #tpu.memory_space<vmem>>, vector<1x32xf32>
    %55 = arith.index_cast %c3_i32 : i32 to index
    %c0_14 = arith.constant 0 : index
    %56 = vector.load %arg15[%55, %c0_14] : memref<8x32xf32, #tpu.memory_space<vmem>>, vector<1x32xf32>
    tpu.vector_store %arg15[%55, %c0_14], %54 {strides = array<i32>} : memref<8x32xf32, #tpu.memory_space<vmem>>, vector<1x32xf32>,
    %c4_i32 = arith.constant 4 : i32
    %57 = arith.addi %0, %c4_i32 : i32
    %58 = arith.index_cast %57 : i32 to index
    %59 = memref.load %arg1[%58] : memref<8xi32, #tpu.memory_space<smem>>
    %60 = arith.addi %0, %c4_i32 : i32
    %61 = arith.index_cast %60 : i32 to index
    %62 = memref.load %arg2[%61] : memref<8xi32, #tpu.memory_space<smem>>
    %63 = arith.index_cast %59 : i32 to index
    %c0_15 = arith.constant 0 : index
    %64 = vector.load %arg3[%63, %c0_15] : memref<1575x32xf32, #tpu.memory_space<vmem>>, vector<1x32xf32>
    %65 = arith.index_cast %c4_i32 : i32 to index
    %c0_16 = arith.constant 0 : index
    %66 = vector.load %arg14[%65, %c0_16] : memref<8x32xf32, #tpu.memory_space<vmem>>, vector<1x32xf32>
    tpu.vector_store %arg14[%65, %c0_16], %64 {strides = array<i32>} : memref<8x32xf32, #tpu.memory_space<vmem>>, vector<1x32xf32>,
    %67 = arith.index_cast %62 : i32 to index
    %c0_17 = arith.constant 0 : index
    %68 = vector.load %arg4[%67, %c0_17] : memref<5751x32xf32, #tpu.memory_space<vmem>>, vector<1x32xf32>
    %69 = arith.index_cast %c4_i32 : i32 to index
    %c0_18 = arith.constant 0 : index
    %70 = vector.load %arg15[%69, %c0_18] : memref<8x32xf32, #tpu.memory_space<vmem>>, vector<1x32xf32>
    tpu.vector_store %arg15[%69, %c0_18], %68 {strides = array<i32>} : memref<8x32xf32, #tpu.memory_space<vmem>>, vector<1x32xf32>,
    %c5_i32 = arith.constant 5 : i32
    %71 = arith.addi %0, %c5_i32 : i32
    %72 = arith.index_cast %71 : i32 to index
    %73 = memref.load %arg1[%72] : memref<8xi32, #tpu.memory_space<smem>>
    %74 = arith.addi %0, %c5_i32 : i32
    %75 = arith.index_cast %74 : i32 to index
    %76 = memref.load %arg2[%75] : memref<8xi32, #tpu.memory_space<smem>>
    %77 = arith.index_cast %73 : i32 to index
    %c0_19 = arith.constant 0 : index
    %78 = vector.load %arg3[%77, %c0_19] : memref<1575x32xf32, #tpu.memory_space<vmem>>, vector<1x32xf32>
    %79 = arith.index_cast %c5_i32 : i32 to index
    %c0_20 = arith.constant 0 : index
    %80 = vector.load %arg14[%79, %c0_20] : memref<8x32xf32, #tpu.memory_space<vmem>>, vector<1x32xf32>
    tpu.vector_store %arg14[%79, %c0_20], %78 {strides = array<i32>} : memref<8x32xf32, #tpu.memory_space<vmem>>, vector<1x32xf32>,
    %81 = arith.index_cast %76 : i32 to index
    %c0_21 = arith.constant 0 : index
    %82 = vector.load %arg4[%81, %c0_21] : memref<5751x32xf32, #tpu.memory_space<vmem>>, vector<1x32xf32>
    %83 = arith.index_cast %c5_i32 : i32 to index
    %c0_22 = arith.constant 0 : index
    %84 = vector.load %arg15[%83, %c0_22] : memref<8x32xf32, #tpu.memory_space<vmem>>, vector<1x32xf32>
    tpu.vector_store %arg15[%83, %c0_22], %82 {strides = array<i32>} : memref<8x32xf32, #tpu.memory_space<vmem>>, vector<1x32xf32>,
    %c6_i32 = arith.constant 6 : i32
    %85 = arith.addi %0, %c6_i32 : i32
    %86 = arith.index_cast %85 : i32 to index
    %87 = memref.load %arg1[%86] : memref<8xi32, #tpu.memory_space<smem>>
    %88 = arith.addi %0, %c6_i32 : i32
    %89 = arith.index_cast %88 : i32 to index
    %90 = memref.load %arg2[%89] : memref<8xi32, #tpu.memory_space<smem>>
    %91 = arith.index_cast %87 : i32 to index
    %c0_23 = arith.constant 0 : index
    %92 = vector.load %arg3[%91, %c0_23] : memref<1575x32xf32, #tpu.memory_space<vmem>>, vector<1x32xf32>
    %93 = arith.index_cast %c6_i32 : i32 to index
    %c0_24 = arith.constant 0 : index
    %94 = vector.load %arg14[%93, %c0_24] : memref<8x32xf32, #tpu.memory_space<vmem>>, vector<1x32xf32>
    tpu.vector_store %arg14[%93, %c0_24], %92 {strides = array<i32>} : memref<8x32xf32, #tpu.memory_space<vmem>>, vector<1x32xf32>,
    %95 = arith.index_cast %90 : i32 to index
    %c0_25 = arith.constant 0 : index
    %96 = vector.load %arg4[%95, %c0_25] : memref<5751x32xf32, #tpu.memory_space<vmem>>, vector<1x32xf32>
    %97 = arith.index_cast %c6_i32 : i32 to index
    %c0_26 = arith.constant 0 : index
    %98 = vector.load %arg15[%97, %c0_26] : memref<8x32xf32, #tpu.memory_space<vmem>>, vector<1x32xf32>
    tpu.vector_store %arg15[%97, %c0_26], %96 {strides = array<i32>} : memref<8x32xf32, #tpu.memory_space<vmem>>, vector<1x32xf32>,
    %c7_i32 = arith.constant 7 : i32
    %99 = arith.addi %0, %c7_i32 : i32
    %100 = arith.index_cast %99 : i32 to index
    %101 = memref.load %arg1[%100] : memref<8xi32, #tpu.memory_space<smem>>
    %102 = arith.addi %0, %c7_i32 : i32
    %103 = arith.index_cast %102 : i32 to index
    %104 = memref.load %arg2[%103] : memref<8xi32, #tpu.memory_space<smem>>
    %105 = arith.index_cast %101 : i32 to index
    %c0_27 = arith.constant 0 : index
    %106 = vector.load %arg3[%105, %c0_27] : memref<1575x32xf32, #tpu.memory_space<vmem>>, vector<1x32xf32>
    %107 = arith.index_cast %c7_i32 : i32 to index
    %c0_28 = arith.constant 0 : index
    %108 = vector.load %arg14[%107, %c0_28] : memref<8x32xf32, #tpu.memory_space<vmem>>, vector<1x32xf32>
    tpu.vector_store %arg14[%107, %c0_28], %106 {strides = array<i32>} : memref<8x32xf32, #tpu.memory_space<vmem>>, vector<1x32xf32>,
    %109 = arith.index_cast %104 : i32 to index
    %c0_29 = arith.constant 0 : index
    %110 = vector.load %arg4[%109, %c0_29] : memref<5751x32xf32, #tpu.memory_space<vmem>>, vector<1x32xf32>
    %111 = arith.index_cast %c7_i32 : i32 to index
    %c0_30 = arith.constant 0 : index
    %112 = vector.load %arg15[%111, %c0_30] : memref<8x32xf32, #tpu.memory_space<vmem>>, vector<1x32xf32>
    tpu.vector_store %arg15[%111, %c0_30], %110 {strides = array<i32>} : memref<8x32xf32, #tpu.memory_space<vmem>>, vector<1x32xf32>,
    %c8_i32_31 = arith.constant 8 : i32
    %c0_32 = arith.constant 0 : index
    %c0_33 = arith.constant 0 : index
    %113 = vector.load %arg14[%c0_32, %c0_33] : memref<8x32xf32, #tpu.memory_space<vmem>>, vector<8x32xf32>
    %c0_34 = arith.constant 0 : index
    %c0_35 = arith.constant 0 : index
    %114 = vector.load %arg15[%c0_34, %c0_35] : memref<8x32xf32, #tpu.memory_space<vmem>>, vector<8x32xf32>
    %115 = arith.truncf %113 : vector<8x32xf32> to vector<8x32xbf16>
    %116 = arith.truncf %114 : vector<8x32xf32> to vector<8x32xbf16>
    %c0_36 = arith.constant 0 : index
    %c0_37 = arith.constant 0 : index
    %117 = vector.load %arg5[%c0_36, %c0_37] : memref<1x32xbf16, #tpu.memory_space<vmem>>, vector<1x32xbf16>
    %cst = arith.constant dense<0.000000e+00> : vector<1x8xf32>
    %118 = tpu.matmul %117, %115, %cst {dimension_numbers = #tpu.dot_dimension_numbers<[1], [1], [0], [0], [0, 0, 1, 0], [], []>} : vector<1x32xbf16>, vector<8x32xbf16>, vector<1x8xf32> -> vector<1x8xf32>
    %c0_38 = arith.constant 0 : index
    %c0_39 = arith.constant 0 : index
    %119 = vector.load %arg6[%c0_38, %c0_39] : memref<1x32xbf16, #tpu.memory_space<vmem>>, vector<1x32xbf16>
    %cst_40 = arith.constant dense<0.000000e+00> : vector<1x8xf32>
    %120 = tpu.matmul %119, %116, %cst_40 {dimension_numbers = #tpu.dot_dimension_numbers<[1], [1], [0], [0], [0, 0, 1, 0], [], []>} : vector<1x32xbf16>, vector<8x32xbf16>, vector<1x8xf32> -> vector<1x8xf32>
    %121 = arith.addf %118, %120 : vector<1x8xf32>
    %122 = arith.mulf %113, %114 : vector<8x32xf32>
    %123 = arith.truncf %122 : vector<8x32xf32> to vector<8x32xbf16>
    %c0_41 = arith.constant 0 : index
    %c0_42 = arith.constant 0 : index
    %124 = vector.load %arg7[%c0_41, %c0_42] : memref<128x32xbf16, #tpu.memory_space<vmem>>, vector<128x32xbf16>
    %cst_43 = arith.constant dense<0.000000e+00> : vector<128x8xf32>
    %125 = tpu.matmul %124, %123, %cst_43 {dimension_numbers = #tpu.dot_dimension_numbers<[1], [1], [0], [0], [0, 0, 1, 0], [], []>} : vector<128x32xbf16>, vector<8x32xbf16>, vector<128x8xf32> -> vector<128x8xf32>
    %c0_44 = arith.constant 0 : index
    %c0_45 = arith.constant 0 : index
    %126 = vector.load %arg8[%c0_44, %c0_45] : memref<128x1xf32, #tpu.memory_space<vmem>>, vector<128x1xf32>
    %127 = vector.broadcast %126 : vector<128x1xf32> to vector<128x8xf32>
    %128 = arith.addf %125, %127 : vector<128x8xf32>
    %cst_46 = arith.constant 0.000000e+00 : f32
    %129 = vector.broadcast %cst_46 : f32 to vector<128x8xf32>
    %130 = arith.maximumf %128, %129 : vector<128x8xf32>
    %c0_47 = arith.constant 0 : index
    %c0_48 = arith.constant 0 : index
    %131 = vector.load %arg9[%c0_47, %c0_48] : memref<64x128xbf16, #tpu.memory_space<vmem>>, vector<64x128xbf16>
    %132 = arith.truncf %130 : vector<128x8xf32> to vector<128x8xbf16>
    %cst_49 = arith.constant dense<0.000000e+00> : vector<64x8xf32>
    %133 = tpu.matmul %131, %132, %cst_49 {dimension_numbers = #tpu.dot_dimension_numbers<[1], [0], [0], [1], [0, 0, 1, 1], [], []>} : vector<64x128xbf16>, vector<128x8xbf16>, vector<64x8xf32> -> vector<64x8xf32>
    %c0_50 = arith.constant 0 : index
    %c0_51 = arith.constant 0 : index
    %134 = vector.load %arg10[%c0_50, %c0_51] : memref<64x1xf32, #tpu.memory_space<vmem>>, vector<64x1xf32>
    %135 = vector.broadcast %134 : vector<64x1xf32> to vector<64x8xf32>
    %136 = arith.addf %133, %135 : vector<64x8xf32>
    %cst_52 = arith.constant 0.000000e+00 : f32
    %137 = vector.broadcast %cst_52 : f32 to vector<64x8xf32>
    %138 = arith.maximumf %136, %137 : vector<64x8xf32>
    %c0_53 = arith.constant 0 : index
    %c0_54 = arith.constant 0 : index
    %139 = vector.load %arg11[%c0_53, %c0_54] : memref<1x64xbf16, #tpu.memory_space<vmem>>, vector<1x64xbf16>
    %140 = arith.truncf %138 : vector<64x8xf32> to vector<64x8xbf16>
    %cst_55 = arith.constant dense<0.000000e+00> : vector<1x8xf32>
    %141 = tpu.matmul %139, %140, %cst_55 {dimension_numbers = #tpu.dot_dimension_numbers<[1], [0], [0], [1], [0, 0, 1, 1], [], []>} : vector<1x64xbf16>, vector<64x8xbf16>, vector<1x8xf32> -> vector<1x8xf32>
    %142 = arith.addf %121, %141 : vector<1x8xf32>
    %c0_56 = arith.constant 0 : index
    %c0_57 = arith.constant 0 : index
    %143 = vector.load %arg12[%c0_56, %c0_57] : memref<1x1xf32, #tpu.memory_space<vmem>>, vector<1x1xf32>
    %144 = vector.broadcast %143 : vector<1x1xf32> to vector<1x8xf32>
    %145 = arith.addf %142, %144 : vector<1x8xf32>
    %146 = arith.negf %145 : vector<1x8xf32>
    %147 = math.exp %146 : vector<1x8xf32>
    %cst_58 = arith.constant 1.000000e+00 : f32
    %148 = vector.broadcast %cst_58 : f32 to vector<1x8xf32>
    %149 = arith.addf %148, %147 : vector<1x8xf32>
    %150 = arith.divf %148, %149 : vector<1x8xf32>
    %151 = vector.shape_cast %150 : vector<1x8xf32> to vector<1x1x8xf32>
    %c0_59 = arith.constant 0 : index
    %c0_60 = arith.constant 0 : index
    %c0_61 = arith.constant 0 : index
    %152 = vector.load %arg13[%c0_59, %c0_60, %c0_61] : memref<1x1x8xf32, #tpu.memory_space<vmem>>, vector<1x1x8xf32>
    tpu.vector_store %arg13[%c0_59, %c0_60, %c0_61], %151 {strides = array<i32>} : memref<1x1x8xf32, #tpu.memory_space<vmem>>, vector<1x1x8xf32>,
    return
  }
  func.func @transform_0(%arg0: i32, %arg1: memref<8xi32, #tpu.memory_space<smem>>, %arg2: memref<8xi32, #tpu.memory_space<smem>>) -> (i32, i32) {
    %c0_i32 = arith.constant 0 : i32
    %c0_i32_0 = arith.constant 0 : i32
    %c0_i32_1 = arith.constant 0 : i32
    return %c0_i32, %c0_i32_0 : i32, i32
  }
  func.func @transform_1(%arg0: i32, %arg1: memref<8xi32, #tpu.memory_space<smem>>, %arg2: memref<8xi32, #tpu.memory_space<smem>>) -> (i32, i32) {
    %c0_i32 = arith.constant 0 : i32
    %c0_i32_0 = arith.constant 0 : i32
    %c0_i32_1 = arith.constant 0 : i32
    return %c0_i32, %c0_i32_0 : i32, i32
  }
  func.func @transform_2(%arg0: i32, %arg1: memref<8xi32, #tpu.memory_space<smem>>, %arg2: memref<8xi32, #tpu.memory_space<smem>>) -> (i32, i32) {
    %c0_i32 = arith.constant 0 : i32
    %c0_i32_0 = arith.constant 0 : i32
    %c0_i32_1 = arith.constant 0 : i32
    return %c0_i32, %c0_i32_0 : i32, i32
  }
  func.func @transform_3(%arg0: i32, %arg1: memref<8xi32, #tpu.memory_space<smem>>, %arg2: memref<8xi32, #tpu.memory_space<smem>>) -> (i32, i32) {
    %c0_i32 = arith.constant 0 : i32
    %c0_i32_0 = arith.constant 0 : i32
    %c0_i32_1 = arith.constant 0 : i32
    return %c0_i32, %c0_i32_0 : i32, i32
  }
  func.func @transform_4(%arg0: i32, %arg1: memref<8xi32, #tpu.memory_space<smem>>, %arg2: memref<8xi32, #tpu.memory_space<smem>>) -> (i32, i32) {
    %c0_i32 = arith.constant 0 : i32
    %c0_i32_0 = arith.constant 0 : i32
    %c0_i32_1 = arith.constant 0 : i32
    return %c0_i32, %c0_i32_0 : i32, i32
  }
  func.func @transform_5(%arg0: i32, %arg1: memref<8xi32, #tpu.memory_space<smem>>, %arg2: memref<8xi32, #tpu.memory_space<smem>>) -> (i32, i32) {
    %c0_i32 = arith.constant 0 : i32
    %c0_i32_0 = arith.constant 0 : i32
    %c0_i32_1 = arith.constant 0 : i32
    return %c0_i32, %c0_i32_0 : i32, i32
  }
  func.func @transform_6(%arg0: i32, %arg1: memref<8xi32, #tpu.memory_space<smem>>, %arg2: memref<8xi32, #tpu.memory_space<smem>>) -> (i32, i32) {
    %c0_i32 = arith.constant 0 : i32
    %c0_i32_0 = arith.constant 0 : i32
    %c0_i32_1 = arith.constant 0 : i32
    return %c0_i32, %c0_i32_0 : i32, i32
  }
  func.func @transform_7(%arg0: i32, %arg1: memref<8xi32, #tpu.memory_space<smem>>, %arg2: memref<8xi32, #tpu.memory_space<smem>>) -> (i32, i32) {
    %c0_i32 = arith.constant 0 : i32
    %c0_i32_0 = arith.constant 0 : i32
    %c0_i32_1 = arith.constant 0 : i32
    return %c0_i32, %c0_i32_0 : i32, i32
  }
  func.func @transform_8(%arg0: i32, %arg1: memref<8xi32, #tpu.memory_space<smem>>, %arg2: memref<8xi32, #tpu.memory_space<smem>>) -> (i32, i32) {
    %c0_i32 = arith.constant 0 : i32
    %c0_i32_0 = arith.constant 0 : i32
    %c0_i32_1 = arith.constant 0 : i32
    return %c0_i32, %c0_i32_0 : i32, i32
  }
  func.func @transform_9(%arg0: i32, %arg1: memref<8xi32, #tpu.memory_space<smem>>, %arg2: memref<8xi32, #tpu.memory_space<smem>>) -> (i32, i32) {
    %c0_i32 = arith.constant 0 : i32
    %c0_i32_0 = arith.constant 0 : i32
    %c0_i32_1 = arith.constant 0 : i32
    return %c0_i32, %c0_i32_0 : i32, i32
  }
  func.func @transform_10(%arg0: i32, %arg1: memref<8xi32, #tpu.memory_space<smem>>, %arg2: memref<8xi32, #tpu.memory_space<smem>>) -> (i32, i32, i32) {
    %c0_i32 = arith.constant 0 : i32
    %c0_i32_0 = arith.constant 0 : i32
    %c0_i32_1 = arith.constant 0 : i32
    return %arg0, %c0_i32, %c0_i32_0 : i32, i32, i32
  }
}

</mosaic_0001>

<bundles_post_ra>
// kernel: tpu_custom_call.1
= control target key start
LH: loop header
LB: loop body
LE: loop exit
PB: predicated region body
PF: predicated region fallthrough
CT: control target
= control target key end

     0   :  { %s1846_s0 = inlined_call_operand.vmem [shape: s32[16], index: 0, kind: input, shape index: {}]   ;;  %s1847_s2 = inlined_call_operand.vmem [shape: f32[1575,32], index: 2, kind: input, shape index: {}]   ;;  %s1848_s3 = inlined_call_operand.vmem [shape: f32[5751,32], index: 3, kind: input, shape index: {}]   ;;  %s1849_s4 = inlined_call_operand.vmem [shape: bf16[1,32], index: 4, kind: input, shape index: {}]   ;;  %s1850_s5 = inlined_call_operand.vmem [shape: bf16[1,32], index: 5, kind: input, shape index: {}]   ;;  %s1851_s6 = inlined_call_operand.vmem [shape: bf16[128,32], index: 6, kind: input, shape index: {}]   ;;  %s1852_s7 = inlined_call_operand.vmem [shape: f32[128,1], index: 7, kind: input, shape index: {}]   ;;  %s1853_s8 = inlined_call_operand.vmem [shape: bf16[64,128], index: 8, kind: input, shape index: {}]   ;;  %s1854_s9 = inlined_call_operand.vmem [shape: f32[64,1], index: 9, kind: input, shape index: {}]   ;;  %s1855_s10 = inlined_call_operand.vmem [shape: bf16[1,64], index: 10, kind: input, shape index: {}]   ;;  %s1856_s12 = inlined_call_operand.hbm [shape: f32[2,1,8], index: 12, kind: output, shape index: {}]   ;;  %s1857_s1 = inlined_call_operand.vmem [shape: s32[16], index: 1, kind: input, shape index: {}]   ;;  %s1858_s11 = inlined_call_operand.<no memory space> [shape: f32[1,1], index: 11, kind: input, shape index: {}]  }
   0x1   :  { %1874 = sst [smem:[#allocation19_spill]] %s1856_s12  ;;  %s17_s23 = sshll.u32 %s1846_s0, 4  ;;  %v25_v0 = vstv %s1858_s11  ;;  %s18_s23 = int_to_ptr.vmem [resolvable:$true] %s17_s23 }
   0x2   :  { %s21_s26 = sshll.u32 %s1857_s1, 4  ;;  %26 = vst [vmem:[#allocation7] sm:$0x1] %v25_v0  ;;  %s1310_s29 = scalar_lea.vmem %s18_s23, 16  ;;  %s22_s26 = int_to_ptr.vmem [resolvable:$true] %s21_s26 }
   0x3   :  { %p1311_p0 = scmp.ne.s32.totalorder %s18_s23, %s1310_s29  ;;  %p1315_p1 = scmp.lt.s32.totalorder %s18_s23, %s18_s23 }
   0x4   :  { %p1316_p2 = scmp.lt.s32.totalorder %s1310_s29, %s1310_s29 }
   0x6   :  { %p1317_p3 = por %p1316_p2, %p1315_p1 }
   0x8   :  { %p1318_p4 = pnand %p1317_p3, %p1311_p0 }
   0xa   :  { %1321 = shalt.err (!%p1318_p4)  }
   0xb   :  { %s1398_s30 = smov [#allocation5]   ;;  %s1322_s0 = scalar_lea.vmem %s22_s26, 16 }
   0xc   :  { %20 = dma.vmem_to_smem %s18_s23, 16, %s1398_s30, [#allocation4] }
   0xd   :  { %p1323_p5 = scmp.ne.s32.totalorder %s22_s26, %s1322_s0  ;;  %p1327_p6 = scmp.lt.s32.totalorder %s22_s26, %s22_s26 }
   0xe   :  { %p1328_p7 = scmp.lt.s32.totalorder %s1322_s0, %s1322_s0 }
  0x10   :  { %p1329_p8 = por %p1328_p7, %p1327_p6 }
  0x12   :  { %p1330_p9 = pnand %p1329_p8, %p1323_p5 }
  0x14   :  { %1333 = shalt.err (!%p1330_p9)  }
  0x15   :  { %s1399_s1 = smov [#allocation6]  }
  0x16   :  { %24 = dma.vmem_to_smem %s22_s26, 16, %s1399_s1, [#allocation4] }
  0x17   :  { %1376 = dma.done.wait [#allocation4], 32 }
  0x18   :  { %1377 = vsyncadd [#allocation4], 4294967264 }
  0x19   :  { %28 = sfence }
  0x1a   :  { %29 = vsyncpa [#allocation9], 0 }
  0x1b   :  { %31 = vsyncpa [#allocation9 + $0x1], 0  ;;  %s1478_s11 = smov 0   ;;  %s1480_s13 = smov 0  }
  0x1c   :  { %s1482_s14 = smov 0   ;;  %s1484_s15 = smov 0  }
  0x1d LB: > { %1875 = sst [smem:[#allocation12_spill]] %s1384_s11  ;;  %s1499_s16 = sadd.s32 4294967295, %s1396_s15   ;;  %s1396_s15 = sphi %s1484_s15, %s1895_s15   ;;  %s1392_s14 = sphi %s1482_s14, %s1897_s14   ;;  %s1388_s13 = sphi %s1480_s13, %s1899_s13   ;;  %s1384_s11 = sphi %s1478_s11, %s1898_s11  }
  0x1e   : > { %1876 = sst [smem:[#allocation13_spill]] %s1392_s14  ;;  %s1120_s17 = sadd.s32 4294967294, %s1396_s15  }
  0x1f   : > { %1877 = sst [smem:[#allocation14_spill]] %s1396_s15  ;;  %s1503_s18 = sadd.s32 1, %s1396_s15  }
  0x20   : > { %1878 = sst [smem:[#allocation15_spill]] %s1503_s18  ;;  %s254_s19 = sadd.s32 1, %s1392_s14 }
  0x21   : > { %s251_s20 = ssub.s32 %s1396_s15, %s1503_s18  ;;  %p264_p10 = scmp.ne.s32.totalorder %s1392_s14, %s1388_s13 }
  0x22   : > { %p252_p11 = scmp.eq.s32.totalorder %s251_s20, 0  ;;  %p265_p12 = scmp.eq.s32.totalorder %s1499_s16, 1 }
  0x23   : > { %p270_p13 = scmp.ne.s32.totalorder %s1388_s13, %s1384_s11  ;;  %p271_p0 = scmp.eq.s32.totalorder %s1120_s17, 1 }
  0x24   : > { %s1514_s21 = scalar_select %p252_p11, %s1392_s14, %s254_s19  }
  0x25   : > { %p1516_p1 = por %p265_p12, %p264_p10  ;;  %p1520_p2 = por %p271_p0, %p270_p13 }
  0x26   : > { %1879 = sst [smem:[#allocation16_spill]] %s1514_s21  ;;  %p1122_p3 = scmp.ge.s32.totalorder %s1396_s15, 1 }
  0x27   : > { %s1880_s22 = scalar_select %p1516_p1, 1, 0 }
  0x28   : > { %s1882_s23 = scalar_select %p1520_p2, 1, 0 }
  0x29   : > { %1881 = sst [smem:[#allocation17_spill]] %s1880_s22  ;;  %p319_p4 = scmp.lt.s32.totalorder %s1396_s15, 3 }
  0x2a   : > { %1883 = sst [smem:[#allocation18_spill]] %s1882_s23 }
  0x2b   : > { %p320_p5 = pnand %p1122_p3, %p319_p4 }
  0x2c   : > { %s1527_s24 = sshll.u32 (!%p320_p5), %s1499_s16, 3 }
  0x2d   : > { %323 = sbr.rel (%p320_p5) target bundleno = 820 (0x334), region = 60  ;;  %s354_s25 = sld [smem:[#allocation6 + %s1527_s24]] (!%p320_p5) }
  0x2e   : > { %s1859_s26 = sadd.s32 (!%p320_p5), 1, %s1527_s24  ;;  %s1863_s28 = sadd.s32 (!%p320_p5), 2, %s1527_s24 }
  0x2f   : > { %s364_s27 = sld [smem:[#allocation6 + %s1859_s26]] (!%p320_p5)  ;;  %s1864_s30 = sadd.s32 (!%p320_p5), 3, %s1527_s24 }
  0x30   : > { %s373_s29 = sld [smem:[#allocation6 + %s1863_s28]] (!%p320_p5)  ;;  %s1866_s1 = sadd.s32 (!%p320_p5), 4, %s1527_s24 }
  0x31   : > { %s382_s0 = sld [smem:[#allocation6 + %s1864_s30]] (!%p320_p5)  ;;  %s1868_s19 = sadd.s32 (!%p320_p5), 5, %s1527_s24 }
  0x32   : > { %v1400_v1 = vmov 0.0   ;;  %vm1401_vm0 = vmmov 0   ;;  %s391_s17 = sld [smem:[#allocation6 + %s1866_s1]]  ;;  %vm357_vm1 = vcmask 253952   ;;  %s407_s26 = sadd.s32 6, %s1527_s24  ;;  %v1402_v6 = vmov 0  }
  0x33   : > { %1181 = vmatprep.subr.bf16.mxu0 %v1400_v1  ;;  %1187 = vmatprep.subr.bf16.mxu1 %v1400_v1  ;;  %s1551_s20 = sld [smem:[#allocation6 + %s1868_s19]]  ;;  %s359_s18 = scalar_lea.vmem %s1848_s3, %s354_s25  ;;  %v556_v7 = vld [vmem:[%s1852_s7 + $0x70] sm:$0xff]  ;;  %v557_v9 = vld [vmem:[%s1852_s7 + $0x78] sm:$0xff]  ;;  %v554_v11 = vld [vmem:[%s1852_s7 + $0x60] sm:$0xff]  ;;  %vm431_vm2 = vcmask 261120   ;;  %vm984_vm3 = vcmask 523264  }
  0x34   : > { %1183 = vmatprep.mubr.msk.bf16.mxu0 %vm1401_vm0, %v1400_v1  ;;  %1189 = vmatprep.mubr.msk.bf16.mxu1 %vm1401_vm0, %v1400_v1  ;;  %s1559_s28 = sld [smem:[#allocation6 + %s407_s26]]  ;;  %v360_v2 = vld [vmem:[%s359_s18] sm:$0x1]  ;;  %s1871_s11 = sadd.s32 7, %s1527_s24  ;;  %v555_v13 = vld [vmem:[%s1852_s7 + $0x68] sm:$0xff]  ;;  %v552_v16 = vld [vmem:[%s1852_s7 + $0x50] sm:$0xff] }
  0x35   : > { %s368_s1 = scalar_lea.vmem %s1848_s3, %s364_s27  ;;  %361 = vst.msk [vmem:[#allocation3] sm:$0x1] %vm357_vm1, %v360_v2  ;;  %s1571_s14 = sld [smem:[#allocation6 + %s1871_s11]]  ;;  %1292 = vset.pattern.permute.xlu0 %v1402_v6  ;;  %1293 = vset.pattern.permute.xlu1 %v1402_v6  ;;  %v553_v19 = vld [vmem:[%s1852_s7 + $0x58] sm:$0xff]  ;;  %v550_v22 = vld [vmem:[%s1852_s7 + $0x40] sm:$0xff]  ;;  %v551_v25 = vld [vmem:[%s1852_s7 + $0x48] sm:$0xff] }
  0x36   : > { %v369_v3 = vld [vmem:[%s368_s1] sm:$0x1]  ;;  %s377_s12 = scalar_lea.vmem %s1848_s3, %s373_s29  ;;  %s1578_s25 = sld [smem:[#allocation5 + %s1527_s24]]  ;;  %630 = vperm.xlu0 %1292, %v556_v7   ;;  %620 = vperm.xlu1 %1293, %v554_v11   ;;  %v548_v28 = vld [vmem:[%s1852_s7 + $0x30] sm:$0xff]  ;;  %v549_v31 = vld [vmem:[%s1852_s7 + $0x38] sm:$0xff]  ;;  %vm1046_vm4 = vcmask 57344  }
  0x37   : > { %370 = vst.msk [vmem:[#allocation3 + $0x1] sm:$0x1] %vm357_vm1, %v369_v3  ;;  %v378_v4 = vld [vmem:[%s377_s12] sm:$0x1]  ;;  %s386_s23 = scalar_lea.vmem %s1848_s3, %s382_s0  ;;  %s1884_s30 = sadd.s32 1, %s1527_s24  ;;  %v547_v33 = vld [vmem:[%s1852_s7 + $0x28] sm:$0xff] }
  0x38   : > { %379 = vst.msk [vmem:[#allocation3 + $0x2] sm:$0x1] %vm357_vm1, %v378_v4  ;;  %v387_v5 = vld [vmem:[%s386_s23] sm:$0x1]  ;;  %s395_s29 = scalar_lea.vmem %s1848_s3, %s391_s17  ;;  %s1586_s1 = sld [smem:[#allocation5 + %s1884_s30]]  ;;  %v544_v39 = vld [vmem:[%s1852_s7 + $0x10] sm:$0xff] }
  0x39   : > { %388 = vst.msk [vmem:[#allocation3 + $0x3] sm:$0x1] %vm357_vm1, %v387_v5  ;;  %v396_v8 = vld [vmem:[%s395_s29] sm:$0x1]  ;;  %s404_s17 = scalar_lea.vmem %s1848_s3, %s1551_s20  ;;  %s1885_s21 = sadd.s32 2, %s1527_s24  ;;  %v545_v42 = vld [vmem:[%s1852_s7 + $0x18] sm:$0xff] }
  0x3a   : > { %s1598_s23 = sld [smem:[#allocation5 + %s1885_s21]]  ;;  %397 = vst.msk [vmem:[#allocation3 + $0x4] sm:$0x1] %vm357_vm1, %v396_v8  ;;  %v405_v10 = vld [vmem:[%s404_s17] sm:$0x1]  ;;  %s413_s12 = scalar_lea.vmem %s1848_s3, %s1559_s28  ;;  %635 = vperm.xlu0 %1292, %v557_v9   ;;  %625 = vperm.xlu1 %1293, %v555_v13   ;;  %v543_v45 = vld [vmem:[%s1852_s7 + $0x8] sm:$0xff] }
  0x3b   : > { %s1886_s19 = sadd.s32 3, %s1527_s24  ;;  %406 = vst.msk [vmem:[#allocation3 + $0x5] sm:$0x1] %vm357_vm1, %v405_v10  ;;  %v414_v12 = vld [vmem:[%s413_s12] sm:$0x1]  ;;  %s1887_s21 = sadd.s32 4, %s1527_s24 }
  0x3c   : > { %s381_s0 = sld [smem:[#allocation5 + %s1886_s19]]  ;;  %415 = vst.msk [vmem:[#allocation3 + $0x6] sm:$0x1] %vm357_vm1, %v414_v12  ;;  %s422_s28 = scalar_lea.vmem %s1848_s3, %s1571_s14  ;;  %v546_v32 = vld [vmem:[%s1852_s7 + $0x20] sm:$0xff]  ;;  %v1295_v47 = vld [vmem:[%s1851_s6 + $0x8] sm:$0xff]   ;;  %v1296_v48 = vld [vmem:[%s1851_s6 + $0x10] sm:$0xff]  }
  0x3d   : > { %s390_s15 = sld [smem:[#allocation5 + %s1887_s21]]  ;;  %s1888_s30 = sadd.s32 5, %s1527_s24  ;;  %v423_v14 = vld [vmem:[%s422_s28] sm:$0x1]  ;;  %v840_v49 = vld [vmem:[%s1854_s9 + $0x30] sm:$0xff]  ;;  %v841_v50 = vld [vmem:[%s1854_s9 + $0x38] sm:$0xff] }
  0x3e   : > { %s399_s29 = sld [smem:[#allocation5 + %s1888_s30]]  ;;  %s355_s12 = scalar_lea.vmem %s1847_s2, %s1578_s25  ;;  %424 = vst.msk [vmem:[#allocation3 + $0x7] sm:$0x1] %vm357_vm1, %v423_v14  ;;  %610 = vperm.xlu0 %1292, %v552_v16   ;;  %615 = vperm.xlu1 %1293, %v553_v19   ;;  %v430_v35 = vld [vmem:[%s1850_s5] sm:$0x1]  ;;  %v839_v52 = vld [vmem:[%s1854_s9 + $0x28] sm:$0xff] }
  0x3f   : > { %s408_s21 = sld [smem:[#allocation5 + %s407_s26]]  ;;  %v356_v15 = vld [vmem:[%s355_s12] sm:$0x1]  ;;  %s365_s14 = scalar_lea.vmem %s1847_s2, %s1586_s1  ;;  %v1297_v53 = vld [vmem:[%s1851_s6 + $0x18] sm:$0xff]   ;;  %v836_v55 = vld [vmem:[%s1854_s9 + $0x10] sm:$0xff] }
  0x40   : > { %s1889_s27 = sadd.s32 7, %s1527_s24  ;;  %358 = vst.msk [vmem:[#allocation2] sm:$0x1] %vm357_vm1, %v356_v15  ;;  %v366_v17 = vld [vmem:[%s365_s14] sm:$0x1]  ;;  %s374_s25 = scalar_lea.vmem %s1847_s2, %s1598_s23  ;;  %v837_v56 = vld [vmem:[%s1854_s9 + $0x18] sm:$0xff] }
  0x41   : > { %s1639_s30 = sld [smem:[#allocation5 + %s1889_s27]]  ;;  %367 = vst.msk [vmem:[#allocation2 + $0x1] sm:$0x1] %vm357_vm1, %v366_v17  ;;  %v375_v18 = vld [vmem:[%s374_s25] sm:$0x1]  ;;  %v835_v58 = vld [vmem:[%s1854_s9 + $0x8] sm:$0xff] }
  0x42   : > { %s383_s24 = scalar_lea.vmem %s1847_s2, %s381_s0  ;;  %376 = vst.msk [vmem:[#allocation2 + $0x2] sm:$0x1] %vm357_vm1, %v375_v18  ;;  %600 = vperm.xlu0 %1292, %v550_v22   ;;  %605 = vperm.xlu1 %1293, %v551_v25   ;;  %v1294_v36 = vld [vmem:[%s1851_s6] sm:$0xff]   ;;  %v1299_v59 = vld [vmem:[%s1851_s6 + $0x28] sm:$0xff]   ;;  %v1300_v60 = vld [vmem:[%s1851_s6 + $0x30] sm:$0xff]   ;;  %s349_s18 = sand.u32 1, %s1388_s13  }
  0x43   : > { %v384_v20 = vld [vmem:[%s383_s24] sm:$0x1]  ;;  %s392_s23 = scalar_lea.vmem %s1847_s2, %s390_s15  ;;  %v1029_v61 = vld [vmem:[#allocation7] sm:$0x1]  ;;  %v1301_v62 = vld [vmem:[%s1851_s6 + $0x38] sm:$0xff]   ;;  %s1148_s12 = sshll.u32 %s1499_s16, 4 }
  0x44   : > { %385 = vst.msk [vmem:[#allocation2 + $0x3] sm:$0x1] %vm357_vm1, %v384_v20  ;;  %v393_v21 = vld [vmem:[%s392_s23] sm:$0x1]  ;;  %s401_s0 = scalar_lea.vmem %s1847_s2, %s399_s29  ;;  %s350_s17 = scalar_lea.vmem [#allocation8], %s349_s18 }
  0x45   : > { %394 = vst.msk [vmem:[#allocation2 + $0x4] sm:$0x1] %vm357_vm1, %v393_v21  ;;  %v402_v23 = vld [vmem:[%s401_s0] sm:$0x1]  ;;  %s410_s25 = scalar_lea.vmem %s1847_s2, %s408_s21  ;;  %v426_v26 = vld [vmem:[#allocation3] sm:$0xff]  ;;  %s1061_s23 = sshll.u32 %s350_s17, 4  ;;  %s1062_s23 = int_to_ptr.vmem [resolvable:$true] %s1061_s23 }
  0x46   : > { %403 = vst.msk [vmem:[#allocation2 + $0x5] sm:$0x1] %vm357_vm1, %v402_v23  ;;  %v411_v24 = vld [vmem:[%s410_s25] sm:$0x1]  ;;  %v428_v29 = vpack.c.bf16 %v426_v26, %v426_v26  ;;  %590 = vperm.xlu0 %1292, %v548_v28   ;;  %595 = vperm.xlu1 %1293, %v549_v31   ;;  %s1891_s0 = sld [smem:[#allocation19_spill]]  ;;  %s1049_s20 = scalar_lea.sflag [#allocation9], %s349_s18 }
  0x47   : > { %s419_s1 = scalar_lea.vmem %s1847_s2, %s1639_s30  ;;  %412 = vst.msk [vmem:[#allocation2 + $0x6] sm:$0x1] %vm357_vm1, %v411_v24  ;;  %v542_v44 = vld [vmem:[%s1852_s7] sm:$0xff]  ;;  %s1334_s11 = scalar_lea.vmem %s1062_s23, 16 }
  0x48   : > { %v420_v27 = vld [vmem:[%s419_s1] sm:$0x1]  ;;  %v436_v30 = vsel %vm431_vm2, %v428_v29, 0  ;;  %p1335_p6 = scmp.ne.s32.totalorder %s1062_s23, %s1334_s11  ;;  %s1403_s26 = smov [#allocation8]  }
  0x49   : > { %421 = vst.msk [vmem:[#allocation2 + $0x7] sm:$0x1] %vm357_vm1, %v420_v27  ;;  %1182 = vmatpush3.bf16.xpose.msra.mxu0 %v436_v30  ;;  %v429_v46 = vld [vmem:[%s1849_s4] sm:$0x1]  ;;  %s1338_s25 = sshll.u32 %s1403_s26, 4  ;;  %s1339_s25 = int_to_ptr.vmem [resolvable:$false] %s1338_s25 }
  0x4a   : > { %580 = vperm.xlu0 %1292, %v546_v32   ;;  %585 = vperm.xlu1 %1293, %v547_v33   ;;  %v838_v51 = vld [vmem:[%s1854_s9 + $0x20] sm:$0xff]  ;;  %p1336_p7 = pnand %p1335_p6, %p1516_p1  ;;  %s1340_s16 = scalar_lea.vmem %s1339_s25, 32 }
  0x4b   : > { %v1298_v54 = vld [vmem:[%s1851_s6 + $0x20] sm:$0xff]   ;;  %p1341_p9 = scmp.lt.s32.totalorder %s1062_s23, %s1339_s25  ;;  %p1342_p10 = scmp.lt.s32.totalorder %s1340_s16, %s1334_s11 }
  0x4c   : > { %v834_v57 = vld [vmem:[%s1854_s9] sm:$0xff]  ;;  %s1811_s19 = scalar_lea.hbm %s1891_s0, %s1148_s12  ;;  %p1337_p8 = pneg %p1336_p7 }
  0x4d   : > { %v1302_v63 = vld [vmem:[%s1853_s8] sm:$0xff]   ;;  %p1343_p11 = por %p1342_p10, %p1341_p9 }
  0x4e   : > { %570 = vperm.xlu0 %1292, %v544_v39   ;;  %575 = vperm.xlu1 %1293, %v545_v42  }
  0x4f   : > { %p1344_p12 = pnand %p1343_p11, %p1337_p8 }
  0x50   : > { %v425_v34 = vld [vmem:[#allocation2] sm:$0xff]  ;;  %1184 = vmatmul.mubr.msk.bf16.vlgmr.msra.gmra.mxu0 %vm431_vm2, %v430_v35 }
  0x51   : > { %v427_v37 = vpack.c.bf16 %v425_v34, %v425_v34  ;;  %v524_v38 = vmul.f32 %v426_v26, %v425_v34  ;;  %1195 = vmatprep.mubr.msk.bf16.mxu0 %vm431_vm2, %v1294_v36 }
  0x52   : > { %560 = vperm.xlu0 %1292, %v542_v44   ;;  %565 = vperm.xlu1 %1293, %v543_v45  }
  0x53   : > { %v482_v40 = vsel %vm431_vm2, %v427_v37, 0  ;;  %v525_v41 = vpack.c.bf16 %v524_v38, %v524_v38 }
  0x54   : > { %1188 = vmatpush3.bf16.xpose.msra.mxu1 %v482_v40 }
  0x55   : > { %1247 = vmatprep.subr.msk.bf16.mxu0 %vm431_vm2, %v525_v41  ;;  %v703_v43 = vsel %vm431_vm2, %v525_v41, 0 }
  0x56   : > { %1194 = vmatpush3.bf16.xpose.msra.mxu0 %v703_v43  ;;  %874 = vperm.xlu0 %1292, %v840_v49  }
  0x57   : > { %1235 = vmatprep.subr.bf16.mxu0 %v1400_v1  ;;  %879 = vperm.xlu1 %1293, %v841_v50  }
  0x5a   : > { %864 = vperm.xlu0 %1292, %v838_v51  }
  0x5b   : > { %1190 = vmatmul.mubr.msk.bf16.vlgmr.msra.gmra.mxu1 %vm431_vm2, %v429_v46  ;;  %869 = vperm.xlu1 %1293, %v839_v52  }
  0x5c   : > { %1227 = vmatprep.mubr.bf16.mxu1 %v1302_v63 }
  0x5d   : > { %1196 = vmatmul.mubr.msk.bf16.vlgmr.msra.gmra.mxu0 %vm431_vm2, %v1295_v47 }
  0x5e   : > { %1199 = vmatprep.mubr.msk.bf16.mxu0 %vm431_vm2, %v1296_v48  ;;  %854 = vperm.xlu0 %1292, %v836_v55  }
  0x5f   : > { %859 = vperm.xlu1 %1293, %v837_v56  }
  0x62   : > { %844 = vperm.xlu0 %1292, %v834_v57  }
  0x63   : > { %849 = vperm.xlu1 %1293, %v835_v58  }
  0x65   : > { %1200 = vmatmul.mubr.msk.bf16.gmra.mxu0 %vm431_vm2, %v1297_v53 }
  0x66   : > { %1203 = vmatprep.mubr.msk.bf16.mxu0 %vm431_vm2, %v1298_v54  ;;  %1032 = vperm.xlu0 %1292, %v1029_v61  }
  0x6d   : > { %1204 = vmatmul.mubr.msk.bf16.gmra.mxu0 %vm431_vm2, %v1299_v59 }
  0x6e   : > { %1207 = vmatprep.mubr.msk.bf16.mxu0 %vm431_vm2, %v1300_v60 }
  0x75   : > { %1208 = vmatmul.mubr.msk.bf16.gmra.mxu0 %vm431_vm2, %v1301_v62 }
  0x76   : > { %1243 = vmatprep.mubr.msk.bf16.mxu0 %vm1401_vm0, %v1400_v1 }
  0xb1   : > { %v621_v13 = vpop.permute.xlu1 %620  ;;  %v631_v15 = vpop.permute.xlu0 %630 }
  0xb5   : > { %v626_v18 = vpop.permute.xlu1 %625  ;;  %v636_v20 = vpop.permute.xlu0 %635 }
  0xb9   : > { %v616_v23 = vpop.permute.xlu1 %615  ;;  %v611_v25 = vpop.permute.xlu0 %610 }
  0xbd   : > { %v606_v28 = vpop.permute.xlu1 %605  ;;  %v601_v30 = vpop.permute.xlu0 %600 }
  0xc1   : > { %v596_v36 = vpop.permute.xlu1 %595  ;;  %v591_v42 = vpop.permute.xlu0 %590 }
  0xc5   : > { %v586_v50 = vpop.permute.xlu1 %585  ;;  %v581_v53 = vpop.permute.xlu0 %580 }
  0xc9   : > { %v576_v59 = vpop.permute.xlu1 %575  ;;  %v571_v63 = vpop.permute.xlu0 %570 }
 0x110   : > { %v472_v0 = vpop.f32.mrf.mxu0 }
 0x112   : > { %v1185_v2 = vpop.f32.mrf.mxu0 }
 0x114   : > { %v475_v3 = vpop.f32.mrf.mxu0 }
 0x116   : > { %v1186_v4 = vpop.f32.mrf.mxu0 }
 0x11b   : > { %v518_v5 = vpop.f32.mrf.mxu1 }
 0x11c   : > { %v1779_v6 = vadd.f32 %v518_v5, %v472_v0 }
 0x11d   : > { %v1781_v7 = vpop.f32.mrf.mxu0  ;;  %v1191_v8 = vpop.f32.mrf.mxu1 }
 0x11e   : > { %v566_v8 = vpop.permute.xlu1 %565 }
 0x11f   : > { %v1783_v9 = vpop.f32.mrf.mxu0  ;;  %v521_v10 = vpop.f32.mrf.mxu1 }
 0x120   : > { %v748_v10 = vadd.f32 %v1781_v7, %v571_v63  ;;  %v1303_v7 = vld [vmem:[%s1853_s8 + $0x8] sm:$0xff]  }
 0x121   : > { %v1198_v11 = vpop.f32.mrf.mxu0  ;;  %v1192_v12 = vpop.f32.mrf.mxu1 }
 0x122   : > { %v751_v3 = vadd.f32 %v1198_v11, %v576_v59  ;;  %v979_v59 = vld [vmem:[%s1855_s10] sm:$0x1] }
 0x123   : > { %v1785_v14 = vpop.f32.mrf.mxu0 }
 0x125   : > { %v1201_v16 = vpop.f32.mrf.mxu0 }
 0x126   : > { %v764_v57 = vadd.f32 %v1201_v16, %v591_v42  ;;  %v743_v16 = vadd.f32 %v1785_v14, %v566_v8  ;;  %v1304_v14 = vld [vmem:[%s1853_s8 + $0x10] sm:$0xff]  }
 0x127   : > { %v755_v17 = vpop.f32.mrf.mxu0 }
 0x128   : > { %v808_v0 = vmax.f32 %v764_v57, 0.0  ;;  %v756_v2 = vadd.f32 %v755_v17, %v581_v53  ;;  %v803_v11 = vmax.f32 %v743_v16, 0.0 }
 0x129   : > { %v1202_v19 = vpop.f32.mrf.mxu0 }
 0x12a   : > { %v767_v54 = vadd.f32 %v1202_v19, %v596_v36  ;;  %v806_v12 = vmax.f32 %v756_v2, 0.0  ;;  %v804_v19 = vmax.f32 %v748_v10, 0.0 }
 0x12b   : > { %v758_v21 = vpop.f32.mrf.mxu0 }
 0x12c   : > { %v809_v60 = vmax.f32 %v767_v54, 0.0  ;;  %v759_v61 = vadd.f32 %v758_v21, %v586_v50 }
 0x12d   : > { %v1205_v22 = vpop.f32.mrf.mxu0 }
 0x12e   : > { %v780_v43 = vadd.f32 %v1205_v22, %v611_v25  ;;  %v829_v4 = vpack.c.bf16 %v809_v60, %v808_v0  ;;  %v807_v5 = vmax.f32 %v759_v61, 0.0  ;;  %v1035_v60 = vlaneseq }
 0x12f   : > { %v771_v24 = vpop.f32.mrf.mxu0 }
 0x130   : > { %v812_v51 = vmax.f32 %v780_v43, 0.0  ;;  %v772_v52 = vadd.f32 %v771_v24, %v601_v30  ;;  %v880_v24 = vpop.permute.xlu1 %879  ;;  %v1036_v61 = vshrl.u32 %v1035_v60, 7 }
 0x131   : > { %v1206_v26 = vpop.f32.mrf.mxu0 }
 0x132   : > { %v783_v38 = vadd.f32 %v1206_v26, %v616_v23  ;;  %v810_v58 = vmax.f32 %v772_v52, 0.0 }
 0x133   : > { %v774_v27 = vpop.f32.mrf.mxu0 }
 0x134   : > { %v813_v47 = vmax.f32 %v783_v38, 0.0  ;;  %v775_v48 = vadd.f32 %v774_v27, %v606_v28 }
 0x135   : > { %v1209_v29 = vpop.f32.mrf.mxu0 }
 0x136   : > { %v796_v32 = vadd.f32 %v1209_v29, %v631_v15  ;;  %v831_v55 = vpack.c.bf16 %v813_v47, %v812_v51  ;;  %v811_v56 = vmax.f32 %v775_v48, 0.0  ;;  %v805_v15 = vmax.f32 %v751_v3, 0.0  ;;  %v870_v29 = vpop.permute.xlu1 %869 }
 0x137   : > { %v787_v31 = vpop.f32.mrf.mxu0 }
 0x138   : > { %v788_v34 = vadd.f32 %v787_v31, %v621_v13  ;;  %v816_v39 = vmax.f32 %v796_v32, 0.0  ;;  %v830_v62 = vpack.c.bf16 %v811_v56, %v810_v58  ;;  %v561_v13 = vpop.permute.xlu0 %560  ;;  %v827_v17 = vpack.c.bf16 %v805_v15, %v804_v19 }
 0x139   : > { %v1210_v33 = vpop.f32.mrf.mxu0 }
 0x13a   : > { %v799_v35 = vadd.f32 %v1210_v33, %v636_v20  ;;  %v814_v44 = vmax.f32 %v788_v34, 0.0  ;;  %v740_v20 = vadd.f32 %v1783_v9, %v561_v13  ;;  %v1305_v9 = vld [vmem:[%s1853_s8 + $0x18] sm:$0xff]   ;;  %v860_v36 = vpop.permute.xlu1 %859 }
 0x13b   : > { %v790_v37 = vpop.f32.mrf.mxu0 }
 0x13c   : > { %v817_v40 = vmax.f32 %v799_v35, 0.0  ;;  %v791_v41 = vadd.f32 %v790_v37, %v626_v18  ;;  %v828_v18 = vpack.c.bf16 %v807_v5, %v806_v12  ;;  %v802_v21 = vmax.f32 %v740_v20, 0.0  ;;  %v875_v26 = vpop.permute.xlu0 %874 }
 0x13e   : > { %v833_v45 = vpack.c.bf16 %v817_v40, %v816_v39  ;;  %v815_v46 = vmax.f32 %v791_v41, 0.0  ;;  %v826_v22 = vpack.c.bf16 %v803_v11, %v802_v21  ;;  %v850_v48 = vpop.permute.xlu1 %849 }
 0x140   : > { %v832_v49 = vpack.c.bf16 %v815_v46, %v814_v44  ;;  %1211 = vmatprep.subr.bf16.mxu1 %v833_v45  ;;  %v865_v31 = vpop.permute.xlu0 %864 }
 0x141   : > { %1212 = vmatpush3.bf16.msra.mxu1 %v833_v45 }
 0x142   : > { %1213 = vmatprep.subr.bf16.mxu1 %v832_v49 }
 0x144   : > { %v855_v42 = vpop.permute.xlu0 %854 }
 0x145   : > { %1214 = vmatpush3.bf16.msra.mxu1 %v832_v49 }
 0x146   : > { %1215 = vmatprep.subr.bf16.mxu1 %v831_v55 }
 0x148   : > { %v845_v52 = vpop.permute.xlu0 %844 }
 0x149   : > { %1216 = vmatpush3.bf16.msra.mxu1 %v831_v55 }
 0x14a   : > { %1217 = vmatprep.subr.bf16.mxu1 %v830_v62 }
 0x14c   : > { %v1033_v63 = vpop.permute.xlu0 %1032 }
 0x14d   : > { %1218 = vmatpush3.bf16.msra.mxu1 %v830_v62  ;;  %v1037_v62 = vsub.s32 0, %v1036_v61 }
 0x14e   : > { %1219 = vmatprep.subr.bf16.mxu1 %v829_v4 }
 0x14f   : > { %v1038_v2 = vrot.slane %v1033_v63, %v1037_v62 }
 0x151   : > { %1220 = vmatpush3.bf16.msra.mxu1 %v829_v4 }
 0x152   : > { %1221 = vmatprep.subr.bf16.mxu1 %v828_v18 }
 0x155   : > { %1222 = vmatpush3.bf16.msra.mxu1 %v828_v18 }
 0x156   : > { %1223 = vmatprep.subr.bf16.mxu1 %v827_v17 }
 0x159   : > { %1224 = vmatpush3.bf16.msra.mxu1 %v827_v17 }
 0x15a   : > { %1225 = vmatprep.subr.bf16.mxu1 %v826_v22 }
 0x15d   : > { %1226 = vmatpush3.bf16.msra.mxu1 %v826_v22 }
 0x160   : > { %1228 = vmatmul.mubr.bf16.vlgmr.msra.gmra.mxu1 %v1303_v7 }
 0x161   : > { %1231 = vmatprep.mubr.bf16.mxu1 %v1304_v14 }
 0x168   : > { %1232 = vmatmul.mubr.bf16.gmra.mxu1 %v1305_v9 }
 0x220   : > { %v1229_v23 = vpop.f32.mrf.mxu1 }
 0x221   : > { %v949_v46 = vadd.f32 %v1229_v23, %v855_v42 }
 0x222   : > { %v940_v25 = vpop.f32.mrf.mxu1 }
 0x223   : > { %v973_v53 = vmax.f32 %v949_v46, 0.0  ;;  %v941_v54 = vadd.f32 %v940_v25, %v845_v52 }
 0x224   : > { %v1230_v27 = vpop.f32.mrf.mxu1 }
 0x225   : > { %v952_v43 = vadd.f32 %v1230_v27, %v860_v36  ;;  %v971_v57 = vmax.f32 %v941_v54, 0.0 }
 0x226   : > { %v943_v28 = vpop.f32.mrf.mxu1 }
 0x227   : > { %v974_v49 = vmax.f32 %v952_v43, 0.0  ;;  %v944_v50 = vadd.f32 %v943_v28, %v850_v48 }
 0x228   : > { %v1233_v30 = vpop.f32.mrf.mxu1 }
 0x229   : > { %v965_v33 = vadd.f32 %v1233_v30, %v875_v26  ;;  %v981_v55 = vpack.c.bf16 %v974_v49, %v973_v53  ;;  %v972_v56 = vmax.f32 %v944_v50, 0.0 }
 0x22a   : > { %v956_v32 = vpop.f32.mrf.mxu1 }
 0x22b   : > { %v977_v38 = vmax.f32 %v965_v33, 0.0  ;;  %v957_v39 = vadd.f32 %v956_v32, %v865_v31  ;;  %v980_v58 = vpack.c.bf16 %v972_v56, %v971_v57 }
 0x22c   : > { %v1234_v34 = vpop.f32.mrf.mxu1 }
 0x22d   : > { %v968_v35 = vadd.f32 %v1234_v34, %v880_v24  ;;  %v975_v47 = vmax.f32 %v957_v39, 0.0 }
 0x22e   : > { %v959_v37 = vpop.f32.mrf.mxu1 }
 0x22f   : > { %v978_v40 = vmax.f32 %v968_v35, 0.0  ;;  %v960_v41 = vadd.f32 %v959_v37, %v870_v29 }
 0x231   : > { %v983_v44 = vpack.c.bf16 %v978_v40, %v977_v38  ;;  %v976_v45 = vmax.f32 %v960_v41, 0.0 }
 0x233   : > { %1236 = vmatpush3.bf16.msra.mxu0 %v983_v44  ;;  %v982_v51 = vpack.c.bf16 %v976_v45, %v975_v47 }
 0x234   : > { %1237 = vmatprep.subr.bf16.mxu0 %v1400_v1 }
 0x237   : > { %1238 = vmatpush3.bf16.msra.mxu0 %v982_v51 }
 0x238   : > { %1239 = vmatprep.subr.bf16.mxu0 %v1400_v1 }
 0x23b   : > { %1240 = vmatpush3.bf16.msra.mxu0 %v981_v55 }
 0x23c   : > { %1241 = vmatprep.subr.bf16.mxu0 %v1400_v1 }
 0x23f   : > { %1242 = vmatpush3.bf16.msra.mxu0 %v980_v58 }
 0x242   : > { %1244 = vmatmul.mubr.msk.bf16.vlgmr.msra.gmra.mxu0 %vm984_vm3, %v979_v59 }
 0x302   : > { %v1022_v0 = vpop.f32.mrf.mxu0 }
 0x303   : > { %v1028_v3 = vadd.f32 %v1022_v0, %v1779_v6 }
 0x304   : > { %v1245_v4 = vpop.f32.mrf.mxu0 }
 0x305   : > { %v1039_v1 = vadd.f32 %v1038_v2, %v1028_v3 }
 0x306   : > { %v1025_v5 = vpop.f32.mrf.mxu0 }
 0x307   : > { %v1147_v8 = vmul.f32 -1.442695, %v1039_v1 }
 0x308   : > { %v1246_v10 = vpop.f32.mrf.mxu0 }
 0x309   : > { %1306 = vpow2.f32 %v1147_v8 }
 0x316   : > { %v1307_v12 = vpop.eup %1306 }
 0x317   : > { %v1043_v13 = vadd.f32 1.0, %v1307_v12 }
 0x319   : > { %1308 = vrcp.f32 %v1043_v13 }
 0x326   : > { %v1309_v6 = vpop.eup %1308 }
 0x327   : > { %1047 = vst.msk [vmem:[%s350_s17] sm:$0x1] %vm1046_vm4, %v1309_v6 }
 0x328   : > { %1347 = shalt.err (!%p1344_p12)
}
 0x329   : > { %s1348_s15 = scalar_lea.hbm %s1811_s19, 16  ;;  %s1352_s29 = scalar_lea.hbm %s1891_s0, 32 }
 0x32a   : > { %p1349_p13 = scmp.ne.s32.totalorder %s1811_s19, %s1348_s15  ;;  %p1353_p4 = scmp.lt.s32.totalorder %s1811_s19, %s1891_s0 }
 0x32b   : > { %p1354_p5 = scmp.lt.s32.totalorder %s1352_s29, %s1348_s15 }
 0x32c   : > { %p1350_p0 = pnand %p1349_p13, %p1516_p1 }
 0x32d   : > { %p1355_p6 = por %p1354_p5, %p1353_p4 }
 0x32e   : > { %p1351_p3 = pneg %p1350_p0 }
 0x330   : > { %p1356_p7 = pnand %p1355_p6, %p1351_p3 }
 0x332   : > { %1359 = shalt.err (!%p1356_p7)
}
 0x333   : > { %1248 = dma.vmem_to_hbm [thread:$0]  (%p1516_p1), %s1062_s23, 16, %s1811_s19, %s1049_s20  }
 0x334 PF: > { %s1892_s21 = sld [smem:[#allocation14_spill]] }
 0x335   : > { %s1893_s18 = sld [smem:[#allocation12_spill]] }
 0x33a   : > { %p1254_p8 = scmp.ge.s32.totalorder %s1892_s21, 2 }
 0x33b   : > { %s1073_s17 = sand.u32 1, %s1893_s18  }
 0x33c   : > { %p1251_p9 = pnand %p1254_p8, %p1520_p2  ;;  %s1074_s14 = scalar_lea.sflag [#allocation9], %s1073_s17 }
 0x33e   : > { %p1252_p10 = pneg %p1251_p9 }
 0x340   : > { %1379 = dma.done.wait (%p1252_p10), %s1074_s14, 16  }
 0x341   : > { %1381 = vsyncadd (%p1252_p10), %s1074_s14, 4294967280  ;;  %s1895_s15 = sld [smem:[#allocation15_spill]]  ;;  %s1898_s11 = smov %s1388_s13 }
 0x342   : > { %s1896_s27 = sld [smem:[#allocation13_spill]] }
 0x343   : > { %s1897_s14 = sld [smem:[#allocation16_spill]] }
 0x347   : > { %p34_p11 = scmp.ge.s32.totalorder %s1895_s15, 4  }
 0x348   : > { %s1899_s13 = smov %s1896_s27 }
 0x349   :  { %36 = sbr.rel (!%p34_p11) target bundleno = 29 (0x1d), region = 108 }
 0x34e   :  { %1078 = vsyncpa [#allocation9], 1 }
 0x34f   :  { %1080 = vsyncpa [#allocation9 + $0x1], 1 }

// kernel: tpu_custom_call.1
= control target key start
LH: loop header
LB: loop body
LE: loop exit
PB: predicated region body
PF: predicated region fallthrough
CT: control target
= control target key end

     0   :  { %s1301_s0 = inlined_call_operand.vmem [shape: s32[8], index: 0, kind: input, shape index: {}]   ;;  %s1302_s2 = inlined_call_operand.vmem [shape: f32[1575,32], index: 2, kind: input, shape index: {}]   ;;  %s1303_s3 = inlined_call_operand.vmem [shape: f32[5751,32], index: 3, kind: input, shape index: {}]   ;;  %s1304_s4 = inlined_call_operand.vmem [shape: bf16[1,32], index: 4, kind: input, shape index: {}]   ;;  %s1305_s5 = inlined_call_operand.vmem [shape: bf16[1,32], index: 5, kind: input, shape index: {}]   ;;  %s1306_s6 = inlined_call_operand.vmem [shape: bf16[128,32], index: 6, kind: input, shape index: {}]   ;;  %s1307_s7 = inlined_call_operand.vmem [shape: f32[128,1], index: 7, kind: input, shape index: {}]   ;;  %s1308_s8 = inlined_call_operand.vmem [shape: bf16[64,128], index: 8, kind: input, shape index: {}]   ;;  %s1309_s9 = inlined_call_operand.vmem [shape: f32[64,1], index: 9, kind: input, shape index: {}]   ;;  %s1310_s10 = inlined_call_operand.vmem [shape: bf16[1,64], index: 10, kind: input, shape index: {}]   ;;  %s1311_s12 = inlined_call_operand.hbm [shape: f32[1,1,8], index: 12, kind: output, shape index: {}]   ;;  %s1312_s1 = inlined_call_operand.vmem [shape: s32[8], index: 1, kind: input, shape index: {}]   ;;  %s1313_s11 = inlined_call_operand.<no memory space> [shape: f32[1,1], index: 11, kind: input, shape index: {}]  }
   0x1   :  { %s17_s23 = sshll.u32 %s1301_s0, 4  ;;  %s21_s26 = sshll.u32 %s1312_s1, 4  ;;  %v25_v0 = vstv %s1313_s11  ;;  %s18_s23 = int_to_ptr.vmem [resolvable:$true] %s17_s23  ;;  %s22_s26 = int_to_ptr.vmem [resolvable:$true] %s21_s26 }
   0x2   :  { %26 = vst [vmem:[#allocation7] sm:$0x1] %v25_v0  ;;  %s936_s29 = scalar_lea.vmem %s18_s23, 16  ;;  %p941_p1 = scmp.lt.s32.totalorder %s18_s23, %s18_s23 }
   0x3   :  { %p937_p0 = scmp.ne.s32.totalorder %s18_s23, %s936_s29  ;;  %p942_p2 = scmp.lt.s32.totalorder %s936_s29, %s936_s29 }
   0x5   :  { %p943_p3 = por %p942_p2, %p941_p1 }
   0x7   :  { %p944_p4 = pnand %p943_p3, %p937_p0 }
   0x9   :  { %947 = shalt.err (!%p944_p4)  }
   0xa   :  { %s984_s30 = smov [#allocation5]   ;;  %s948_s0 = scalar_lea.vmem %s22_s26, 16 }
   0xb   :  { %20 = dma.vmem_to_smem %s18_s23, 16, %s984_s30, [#allocation4] }
   0xc   :  { %p949_p5 = scmp.ne.s32.totalorder %s22_s26, %s948_s0  ;;  %p953_p6 = scmp.lt.s32.totalorder %s22_s26, %s22_s26 }
   0xd   :  { %p954_p7 = scmp.lt.s32.totalorder %s948_s0, %s948_s0 }
   0xf   :  { %p955_p8 = por %p954_p7, %p953_p6 }
  0x11   :  { %p956_p9 = pnand %p955_p8, %p949_p5 }
  0x13   :  { %959 = shalt.err (!%p956_p9)  }
  0x14   :  { %s985_s1 = smov [#allocation6]  }
  0x15   :  { %24 = dma.vmem_to_smem %s22_s26, 16, %s985_s1, [#allocation4] }
  0x16   :  { %980 = dma.done.wait [#allocation4], 32 }
  0x17   :  { %981 = vsyncadd [#allocation4], 4294967264 }
  0x18   :  { %28 = sfence }
  0x19   :  { %s53_s11 = sld [smem:[#allocation6]]  ;;  %v986_v1 = vmov 0.0   ;;  %vm987_vm0 = vmmov 0   ;;  %vm56_vm1 = vcmask 253952   ;;  %v255_v12 = vld [vmem:[%s1307_s7 + $0x70] sm:$0xff]  ;;  %v988_v14 = vmov 0  }
  0x1a   :  { %845 = vmatprep.subr.bf16.mxu0 %v986_v1  ;;  %851 = vmatprep.subr.bf16.mxu1 %v986_v1  ;;  %s778_s13 = sld [smem:[#allocation6 + $0x1]]  ;;  %v253_v15 = vld [vmem:[%s1307_s7 + $0x60] sm:$0xff]  ;;  %v256_v18 = vld [vmem:[%s1307_s7 + $0x78] sm:$0xff]  ;;  %v254_v19 = vld [vmem:[%s1307_s7 + $0x68] sm:$0xff]  ;;  %vm130_vm2 = vcmask 261120  }
  0x1b   :  { %s780_s14 = sld [smem:[#allocation6 + $0x2]]  ;;  %847 = vmatprep.mubr.msk.bf16.mxu0 %vm987_vm0, %v986_v1  ;;  %853 = vmatprep.mubr.msk.bf16.mxu1 %vm987_vm0, %v986_v1  ;;  %v251_v25 = vld [vmem:[%s1307_s7 + $0x50] sm:$0xff]  ;;  %v252_v26 = vld [vmem:[%s1307_s7 + $0x58] sm:$0xff]  ;;  %v249_v28 = vld [vmem:[%s1307_s7 + $0x40] sm:$0xff] }
  0x1c   :  { %s782_s15 = sld [smem:[#allocation6 + $0x3]]  ;;  %918 = vset.pattern.permute.xlu0 %v988_v14  ;;  %919 = vset.pattern.permute.xlu1 %v988_v14  ;;  %v250_v29 = vld [vmem:[%s1307_s7 + $0x48] sm:$0xff]  ;;  %v129_v30 = vld [vmem:[%s1305_s5] sm:$0x1] }
  0x1d   :  { %s784_s16 = sld [smem:[#allocation6 + $0x4]]  ;;  %329 = vperm.xlu0 %918, %v255_v12   ;;  %319 = vperm.xlu1 %919, %v253_v15   ;;  %v920_v32 = vld [vmem:[%s1306_s6] sm:$0xff]  }
  0x1e   :  { %s786_s17 = sld [smem:[#allocation6 + $0x5]] }
  0x1f   :  { %s58_s20 = scalar_lea.vmem %s1303_s3, %s53_s11  ;;  %s788_s21 = sld [smem:[#allocation6 + $0x6]] }
  0x20   :  { %v59_v2 = vld [vmem:[%s58_s20] sm:$0x1]  ;;  %s67_s24 = scalar_lea.vmem %s1303_s3, %s778_s13  ;;  %s790_s25 = sld [smem:[#allocation6 + $0x7]] }
  0x21   :  { %60 = vst.msk [vmem:[#allocation3] sm:$0x1] %vm56_vm1, %v59_v2  ;;  %v68_v3 = vld [vmem:[%s67_s24] sm:$0x1]  ;;  %s76_s28 = scalar_lea.vmem %s1303_s3, %s780_s14  ;;  %s52_s29 = sld [smem:[#allocation5]]  ;;  %334 = vperm.xlu0 %918, %v256_v18   ;;  %324 = vperm.xlu1 %919, %v254_v19  }
  0x22   :  { %69 = vst.msk [vmem:[#allocation3 + $0x1] sm:$0x1] %vm56_vm1, %v68_v3  ;;  %v77_v4 = vld [vmem:[%s76_s28] sm:$0x1]  ;;  %s85_s1 = scalar_lea.vmem %s1303_s3, %s782_s15  ;;  %s777_s11 = sld [smem:[#allocation5 + $0x1]] }
  0x23   :  { %78 = vst.msk [vmem:[#allocation3 + $0x2] sm:$0x1] %vm56_vm1, %v77_v4  ;;  %v86_v5 = vld [vmem:[%s85_s1] sm:$0x1]  ;;  %s94_s19 = scalar_lea.vmem %s1303_s3, %s784_s16  ;;  %s779_s20 = sld [smem:[#allocation5 + $0x2]] }
  0x24   :  { %87 = vst.msk [vmem:[#allocation3 + $0x3] sm:$0x1] %vm56_vm1, %v86_v5  ;;  %v95_v6 = vld [vmem:[%s94_s19] sm:$0x1]  ;;  %s103_s23 = scalar_lea.vmem %s1303_s3, %s786_s17  ;;  %s1092_s24 = sld [smem:[#allocation5 + $0x3]] }
  0x25   :  { %96 = vst.msk [vmem:[#allocation3 + $0x4] sm:$0x1] %vm56_vm1, %v95_v6  ;;  %v104_v7 = vld [vmem:[%s103_s23] sm:$0x1]  ;;  %s112_s27 = scalar_lea.vmem %s1303_s3, %s788_s21  ;;  %s1098_s28 = sld [smem:[#allocation5 + $0x4]]  ;;  %309 = vperm.xlu0 %918, %v251_v25   ;;  %314 = vperm.xlu1 %919, %v252_v26  }
  0x26   :  { %105 = vst.msk [vmem:[#allocation3 + $0x5] sm:$0x1] %vm56_vm1, %v104_v7  ;;  %v113_v8 = vld [vmem:[%s112_s27] sm:$0x1]  ;;  %s121_s0 = scalar_lea.vmem %s1303_s3, %s790_s25  ;;  %s1104_s17 = sld [smem:[#allocation5 + $0x5]] }
  0x27   :  { %114 = vst.msk [vmem:[#allocation3 + $0x6] sm:$0x1] %vm56_vm1, %v113_v8  ;;  %v122_v9 = vld [vmem:[%s121_s0] sm:$0x1]  ;;  %s54_s18 = scalar_lea.vmem %s1302_s2, %s52_s29  ;;  %s1110_s21 = sld [smem:[#allocation5 + $0x6]] }
  0x28   :  { %123 = vst.msk [vmem:[#allocation3 + $0x7] sm:$0x1] %vm56_vm1, %v122_v9  ;;  %v55_v10 = vld [vmem:[%s54_s18] sm:$0x1]  ;;  %s64_s3 = scalar_lea.vmem %s1302_s2, %s777_s11  ;;  %s1116_s25 = sld [smem:[#allocation5 + $0x7]] }
  0x29   :  { %57 = vst.msk [vmem:[#allocation2] sm:$0x1] %vm56_vm1, %v55_v10  ;;  %v65_v11 = vld [vmem:[%s64_s3] sm:$0x1]  ;;  %s73_s15 = scalar_lea.vmem %s1302_s2, %s779_s20  ;;  %299 = vperm.xlu0 %918, %v249_v28  }
  0x2a   :  { %66 = vst.msk [vmem:[#allocation2 + $0x1] sm:$0x1] %vm56_vm1, %v65_v11  ;;  %v74_v13 = vld [vmem:[%s73_s15] sm:$0x1]  ;;  %s82_s11 = scalar_lea.vmem %s1302_s2, %s1092_s24 }
  0x2b   :  { %75 = vst.msk [vmem:[#allocation2 + $0x2] sm:$0x1] %vm56_vm1, %v74_v13  ;;  %v83_v16 = vld [vmem:[%s82_s11] sm:$0x1]  ;;  %s91_s13 = scalar_lea.vmem %s1302_s2, %s1098_s28 }
  0x2c   :  { %84 = vst.msk [vmem:[#allocation2 + $0x3] sm:$0x1] %vm56_vm1, %v83_v16  ;;  %v92_v17 = vld [vmem:[%s91_s13] sm:$0x1]  ;;  %s100_s19 = scalar_lea.vmem %s1302_s2, %s1104_s17 }
  0x2d   :  { %93 = vst.msk [vmem:[#allocation2 + $0x4] sm:$0x1] %vm56_vm1, %v92_v17  ;;  %v101_v20 = vld [vmem:[%s100_s19] sm:$0x1]  ;;  %s109_s29 = scalar_lea.vmem %s1302_s2, %s1110_s21 }
  0x2e   :  { %102 = vst.msk [vmem:[#allocation2 + $0x5] sm:$0x1] %vm56_vm1, %v101_v20  ;;  %v110_v21 = vld [vmem:[%s109_s29] sm:$0x1]  ;;  %s118_s27 = scalar_lea.vmem %s1302_s2, %s1116_s25 }
  0x2f   :  { %v125_v22 = vld [vmem:[#allocation3] sm:$0xff]  ;;  %111 = vst.msk [vmem:[#allocation2 + $0x6] sm:$0x1] %vm56_vm1, %v110_v21  ;;  %v119_v23 = vld [vmem:[%s118_s27] sm:$0x1] }
  0x30   :  { %v127_v24 = vpack.c.bf16 %v125_v22, %v125_v22  ;;  %120 = vst.msk [vmem:[#allocation2 + $0x7] sm:$0x1] %vm56_vm1, %v119_v23 }
  0x32   :  { %v135_v27 = vsel %vm130_vm2, %v127_v24, 0 }
  0x33   :  { %846 = vmatpush3.bf16.xpose.msra.mxu0 %v135_v27 }
  0x37   :  { %v124_v31 = vld [vmem:[#allocation2] sm:$0xff] }
  0x38   :  { %29 = vsyncpa [#allocation9], 0  ;;  %v126_v33 = vpack.c.bf16 %v124_v31, %v124_v31  ;;  %v223_v34 = vmul.f32 %v125_v22, %v124_v31  ;;  %304 = vperm.xlu1 %919, %v250_v29   ;;  %v247_v35 = vld [vmem:[%s1307_s7 + $0x30] sm:$0xff]  ;;  %v248_v38 = vld [vmem:[%s1307_s7 + $0x38] sm:$0xff]  ;;  %vm683_vm3 = vcmask 523264   ;;  %vm745_vm4 = vcmask 57344  }
  0x39   :  { %289 = vperm.xlu0 %918, %v247_v35   ;;  %v245_v40 = vld [vmem:[%s1307_s7 + $0x20] sm:$0xff]  ;;  %v246_v41 = vld [vmem:[%s1307_s7 + $0x28] sm:$0xff]  ;;  %v922_v44 = vld [vmem:[%s1306_s6 + $0x10] sm:$0xff]  }
  0x3a   :  { %v181_v36 = vsel %vm130_vm2, %v126_v33, 0  ;;  %v224_v37 = vpack.c.bf16 %v223_v34, %v223_v34  ;;  %848 = vmatmul.mubr.msk.bf16.vlgmr.msra.gmra.mxu0 %vm130_vm2, %v129_v30  ;;  %v128_v42 = vld [vmem:[%s1304_s4] sm:$0x1]  ;;  %v921_v43 = vld [vmem:[%s1306_s6 + $0x8] sm:$0xff]   ;;  %v243_v45 = vld [vmem:[%s1307_s7 + $0x10] sm:$0xff] }
  0x3b   :  { %852 = vmatpush3.bf16.xpose.msra.mxu1 %v181_v36  ;;  %859 = vmatprep.mubr.msk.bf16.mxu0 %vm130_vm2, %v920_v32  ;;  %v244_v46 = vld [vmem:[%s1307_s7 + $0x18] sm:$0xff]  ;;  %v241_v47 = vld [vmem:[%s1307_s7] sm:$0xff]  ;;  %v242_v48 = vld [vmem:[%s1307_s7 + $0x8] sm:$0xff] }
  0x3c   :  { %911 = vmatprep.subr.msk.bf16.mxu0 %vm130_vm2, %v224_v37  ;;  %v402_v39 = vsel %vm130_vm2, %v224_v37, 0  ;;  %294 = vperm.xlu1 %919, %v248_v38   ;;  %v923_v49 = vld [vmem:[%s1306_s6 + $0x18] sm:$0xff]   ;;  %v924_v50 = vld [vmem:[%s1306_s6 + $0x20] sm:$0xff]   ;;  %v539_v51 = vld [vmem:[%s1309_s9 + $0x30] sm:$0xff] }
  0x3d   :  { %858 = vmatpush3.bf16.xpose.msra.mxu0 %v402_v39  ;;  %279 = vperm.xlu0 %918, %v245_v40   ;;  %v540_v52 = vld [vmem:[%s1309_s9 + $0x38] sm:$0xff]  ;;  %v537_v53 = vld [vmem:[%s1309_s9 + $0x20] sm:$0xff]  ;;  %v538_v54 = vld [vmem:[%s1309_s9 + $0x28] sm:$0xff] }
  0x3e   :  { %899 = vmatprep.subr.bf16.mxu0 %v986_v1  ;;  %v925_v55 = vld [vmem:[%s1306_s6 + $0x28] sm:$0xff]   ;;  %v926_v56 = vld [vmem:[%s1306_s6 + $0x30] sm:$0xff]   ;;  %v536_v58 = vld [vmem:[%s1309_s9 + $0x18] sm:$0xff] }
  0x3f   :  { %v535_v57 = vld [vmem:[%s1309_s9 + $0x10] sm:$0xff]  ;;  %v533_v59 = vld [vmem:[%s1309_s9] sm:$0xff]  ;;  %v534_v60 = vld [vmem:[%s1309_s9 + $0x8] sm:$0xff] }
  0x40   :  { %284 = vperm.xlu1 %919, %v246_v41   ;;  %v927_v61 = vld [vmem:[%s1306_s6 + $0x38] sm:$0xff]   ;;  %v728_v62 = vld [vmem:[#allocation7] sm:$0x1]  ;;  %v928_v63 = vld [vmem:[%s1308_s8] sm:$0xff]  }
  0x41   :  { %269 = vperm.xlu0 %918, %v243_v45  }
  0x42   :  { %854 = vmatmul.mubr.msk.bf16.vlgmr.msra.gmra.mxu1 %vm130_vm2, %v128_v42 }
  0x43   :  { %891 = vmatprep.mubr.bf16.mxu1 %v928_v63 }
  0x44   :  { %860 = vmatmul.mubr.msk.bf16.vlgmr.msra.gmra.mxu0 %vm130_vm2, %v921_v43  ;;  %274 = vperm.xlu1 %919, %v244_v46  }
  0x45   :  { %863 = vmatprep.mubr.msk.bf16.mxu0 %vm130_vm2, %v922_v44  ;;  %259 = vperm.xlu0 %918, %v241_v47  }
  0x48   :  { %264 = vperm.xlu1 %919, %v242_v48  }
  0x49   :  { %573 = vperm.xlu0 %918, %v539_v51  }
  0x4c   :  { %864 = vmatmul.mubr.msk.bf16.gmra.mxu0 %vm130_vm2, %v923_v49  ;;  %578 = vperm.xlu1 %919, %v540_v52  }
  0x4d   :  { %867 = vmatprep.mubr.msk.bf16.mxu0 %vm130_vm2, %v924_v50  ;;  %563 = vperm.xlu0 %918, %v537_v53  }
  0x50   :  { %568 = vperm.xlu1 %919, %v538_v54  }
  0x51   :  { %553 = vperm.xlu0 %918, %v535_v57  }
  0x54   :  { %868 = vmatmul.mubr.msk.bf16.gmra.mxu0 %vm130_vm2, %v925_v55  ;;  %558 = vperm.xlu1 %919, %v536_v58  }
  0x55   :  { %871 = vmatprep.mubr.msk.bf16.mxu0 %vm130_vm2, %v926_v56  ;;  %543 = vperm.xlu0 %918, %v533_v59  }
  0x58   :  { %548 = vperm.xlu1 %919, %v534_v60  }
  0x59   :  { %731 = vperm.xlu0 %918, %v728_v62  }
  0x5c   :  { %872 = vmatmul.mubr.msk.bf16.gmra.mxu0 %vm130_vm2, %v927_v61 }
  0x5d   :  { %907 = vmatprep.mubr.msk.bf16.mxu0 %vm987_vm0, %v986_v1 }
  0x98   :  { %v320_v13 = vpop.permute.xlu1 %319  ;;  %v330_v15 = vpop.permute.xlu0 %329 }
  0x9c   :  { %v325_v18 = vpop.permute.xlu1 %324  ;;  %v335_v20 = vpop.permute.xlu0 %334 }
  0xa0   :  { %v315_v23 = vpop.permute.xlu1 %314  ;;  %v310_v25 = vpop.permute.xlu0 %309 }
  0xa4   :  { %v300_v30 = vpop.permute.xlu0 %299 }
  0xb3   :  { %v305_v28 = vpop.permute.xlu1 %304 }
  0xb4   :  { %v290_v42 = vpop.permute.xlu0 %289 }
  0xb7   :  { %v295_v36 = vpop.permute.xlu1 %294 }
  0xb8   :  { %v280_v53 = vpop.permute.xlu0 %279 }
  0xbb   :  { %v285_v50 = vpop.permute.xlu1 %284 }
  0xbc   :  { %v270_v63 = vpop.permute.xlu0 %269 }
  0xbf   :  { %v275_v59 = vpop.permute.xlu1 %274 }
  0xfa   :  { %v171_v0 = vpop.f32.mrf.mxu0 }
  0xfc   :  { %v849_v2 = vpop.f32.mrf.mxu0 }
  0xfe   :  { %v174_v3 = vpop.f32.mrf.mxu0 }
 0x100   :  { %v850_v4 = vpop.f32.mrf.mxu0 }
 0x102   :  { %v217_v5 = vpop.f32.mrf.mxu1 }
 0x103   :  { %v1271_v6 = vadd.f32 %v217_v5, %v171_v0 }
 0x104   :  { %v1273_v7 = vpop.f32.mrf.mxu0  ;;  %v855_v8 = vpop.f32.mrf.mxu1 }
 0x105   :  { %v265_v8 = vpop.permute.xlu1 %264 }
 0x106   :  { %v1275_v9 = vpop.f32.mrf.mxu0  ;;  %v220_v10 = vpop.f32.mrf.mxu1 }
 0x107   :  { %v447_v10 = vadd.f32 %v1273_v7, %v270_v63  ;;  %v929_v7 = vld [vmem:[%s1308_s8 + $0x8] sm:$0xff]  }
 0x108   :  { %v862_v11 = vpop.f32.mrf.mxu0  ;;  %v856_v12 = vpop.f32.mrf.mxu1 }
 0x109   :  { %v450_v3 = vadd.f32 %v862_v11, %v275_v59  ;;  %v678_v59 = vld [vmem:[%s1310_s10] sm:$0x1]  ;;  %s989_s10 = smov [#allocation8]  }
 0x10a   :  { %v1277_v14 = vpop.f32.mrf.mxu0  ;;  %s753_s22 = sshll.u32 %s989_s10, 4  ;;  %s754_s22 = int_to_ptr.vmem [resolvable:$true] %s753_s22 }
 0x10b   :  { %s960_s7 = scalar_lea.vmem %s754_s22, 16  ;;  %s964_s23 = scalar_lea.vmem %s754_s22, 32 }
 0x10c   :  { %v865_v16 = vpop.f32.mrf.mxu0  ;;  %p961_p10 = scmp.ne.s32.totalorder %s754_s22, %s960_s7  ;;  %p965_p11 = scmp.lt.s32.totalorder %s754_s22, %s754_s22 }
 0x10d   :  { %v463_v57 = vadd.f32 %v865_v16, %v290_v42  ;;  %v442_v16 = vadd.f32 %v1277_v14, %v265_v8  ;;  %v930_v14 = vld [vmem:[%s1308_s8 + $0x10] sm:$0xff]   ;;  %p966_p12 = scmp.lt.s32.totalorder %s964_s23, %s960_s7 }
 0x10e   :  { %v454_v17 = vpop.f32.mrf.mxu0 }
 0x10f   :  { %v507_v0 = vmax.f32 %v463_v57, 0.0  ;;  %v455_v2 = vadd.f32 %v454_v17, %v280_v53  ;;  %v502_v11 = vmax.f32 %v442_v16, 0.0  ;;  %p967_p13 = por %p966_p12, %p965_p11 }
 0x110   :  { %v866_v19 = vpop.f32.mrf.mxu0 }
 0x111   :  { %v466_v54 = vadd.f32 %v866_v19, %v295_v36  ;;  %v505_v12 = vmax.f32 %v455_v2, 0.0  ;;  %v503_v19 = vmax.f32 %v447_v10, 0.0  ;;  %p968_p0 = pnand %p967_p13, %p961_p10 }
 0x112   :  { %v457_v21 = vpop.f32.mrf.mxu0 }
 0x113   :  { %v508_v60 = vmax.f32 %v466_v54, 0.0  ;;  %v458_v61 = vadd.f32 %v457_v21, %v285_v50 }
 0x114   :  { %v869_v22 = vpop.f32.mrf.mxu0 }
 0x115   :  { %v479_v43 = vadd.f32 %v869_v22, %v310_v25  ;;  %v528_v4 = vpack.c.bf16 %v508_v60, %v507_v0  ;;  %v506_v5 = vmax.f32 %v458_v61, 0.0  ;;  %v734_v60 = vlaneseq }
 0x116   :  { %v470_v24 = vpop.f32.mrf.mxu0 }
 0x117   :  { %v511_v51 = vmax.f32 %v479_v43, 0.0  ;;  %v471_v52 = vadd.f32 %v470_v24, %v300_v30  ;;  %v579_v24 = vpop.permute.xlu1 %578  ;;  %v735_v61 = vshrl.u32 %v734_v60, 7 }
 0x118   :  { %v870_v26 = vpop.f32.mrf.mxu0 }
 0x119   :  { %v482_v38 = vadd.f32 %v870_v26, %v315_v23  ;;  %v509_v58 = vmax.f32 %v471_v52, 0.0 }
 0x11a   :  { %v473_v27 = vpop.f32.mrf.mxu0 }
 0x11b   :  { %v512_v47 = vmax.f32 %v482_v38, 0.0  ;;  %v474_v48 = vadd.f32 %v473_v27, %v305_v28 }
 0x11c   :  { %v873_v29 = vpop.f32.mrf.mxu0 }
 0x11d   :  { %v495_v32 = vadd.f32 %v873_v29, %v330_v15  ;;  %v530_v55 = vpack.c.bf16 %v512_v47, %v511_v51  ;;  %v510_v56 = vmax.f32 %v474_v48, 0.0  ;;  %v504_v15 = vmax.f32 %v450_v3, 0.0  ;;  %v569_v29 = vpop.permute.xlu1 %568 }
 0x11e   :  { %v486_v31 = vpop.f32.mrf.mxu0 }
 0x11f   :  { %v487_v34 = vadd.f32 %v486_v31, %v320_v13  ;;  %v515_v39 = vmax.f32 %v495_v32, 0.0  ;;  %v529_v62 = vpack.c.bf16 %v510_v56, %v509_v58  ;;  %v260_v13 = vpop.permute.xlu0 %259  ;;  %v526_v17 = vpack.c.bf16 %v504_v15, %v503_v19 }
 0x120   :  { %v874_v33 = vpop.f32.mrf.mxu0 }
 0x121   :  { %v498_v35 = vadd.f32 %v874_v33, %v335_v20  ;;  %v513_v44 = vmax.f32 %v487_v34, 0.0  ;;  %v439_v20 = vadd.f32 %v1275_v9, %v260_v13  ;;  %v931_v9 = vld [vmem:[%s1308_s8 + $0x18] sm:$0xff]   ;;  %v559_v36 = vpop.permute.xlu1 %558 }
 0x122   :  { %v489_v37 = vpop.f32.mrf.mxu0 }
 0x123   :  { %v516_v40 = vmax.f32 %v498_v35, 0.0  ;;  %v490_v41 = vadd.f32 %v489_v37, %v325_v18  ;;  %v527_v18 = vpack.c.bf16 %v506_v5, %v505_v12  ;;  %v501_v21 = vmax.f32 %v439_v20, 0.0  ;;  %v574_v26 = vpop.permute.xlu0 %573 }
 0x125   :  { %v532_v45 = vpack.c.bf16 %v516_v40, %v515_v39  ;;  %v514_v46 = vmax.f32 %v490_v41, 0.0  ;;  %v525_v22 = vpack.c.bf16 %v502_v11, %v501_v21  ;;  %v549_v48 = vpop.permute.xlu1 %548 }
 0x127   :  { %v531_v49 = vpack.c.bf16 %v514_v46, %v513_v44  ;;  %875 = vmatprep.subr.bf16.mxu1 %v532_v45  ;;  %v564_v31 = vpop.permute.xlu0 %563 }
 0x128   :  { %876 = vmatpush3.bf16.msra.mxu1 %v532_v45 }
 0x129   :  { %877 = vmatprep.subr.bf16.mxu1 %v531_v49 }
 0x12b   :  { %v554_v42 = vpop.permute.xlu0 %553 }
 0x12c   :  { %878 = vmatpush3.bf16.msra.mxu1 %v531_v49 }
 0x12d   :  { %879 = vmatprep.subr.bf16.mxu1 %v530_v55 }
 0x12f   :  { %v544_v52 = vpop.permute.xlu0 %543 }
 0x130   :  { %880 = vmatpush3.bf16.msra.mxu1 %v530_v55 }
 0x131   :  { %881 = vmatprep.subr.bf16.mxu1 %v529_v62 }
 0x133   :  { %v732_v63 = vpop.permute.xlu0 %731 }
 0x134   :  { %882 = vmatpush3.bf16.msra.mxu1 %v529_v62  ;;  %v736_v62 = vsub.s32 0, %v735_v61 }
 0x135   :  { %883 = vmatprep.subr.bf16.mxu1 %v528_v4 }
 0x136   :  { %v737_v2 = vrot.slane %v732_v63, %v736_v62 }
 0x138   :  { %884 = vmatpush3.bf16.msra.mxu1 %v528_v4 }
 0x139   :  { %885 = vmatprep.subr.bf16.mxu1 %v527_v18 }
 0x13c   :  { %886 = vmatpush3.bf16.msra.mxu1 %v527_v18 }
 0x13d   :  { %887 = vmatprep.subr.bf16.mxu1 %v526_v17 }
 0x140   :  { %888 = vmatpush3.bf16.msra.mxu1 %v526_v17 }
 0x141   :  { %889 = vmatprep.subr.bf16.mxu1 %v525_v22 }
 0x144   :  { %890 = vmatpush3.bf16.msra.mxu1 %v525_v22 }
 0x147   :  { %892 = vmatmul.mubr.bf16.vlgmr.msra.gmra.mxu1 %v929_v7 }
 0x148   :  { %895 = vmatprep.mubr.bf16.mxu1 %v930_v14 }
 0x14f   :  { %896 = vmatmul.mubr.bf16.gmra.mxu1 %v931_v9 }
 0x207   :  { %v893_v23 = vpop.f32.mrf.mxu1 }
 0x208   :  { %v648_v46 = vadd.f32 %v893_v23, %v554_v42 }
 0x209   :  { %v639_v25 = vpop.f32.mrf.mxu1 }
 0x20a   :  { %v672_v53 = vmax.f32 %v648_v46, 0.0  ;;  %v640_v54 = vadd.f32 %v639_v25, %v544_v52 }
 0x20b   :  { %v894_v27 = vpop.f32.mrf.mxu1 }
 0x20c   :  { %v651_v43 = vadd.f32 %v894_v27, %v559_v36  ;;  %v670_v57 = vmax.f32 %v640_v54, 0.0 }
 0x20d   :  { %v642_v28 = vpop.f32.mrf.mxu1 }
 0x20e   :  { %v673_v49 = vmax.f32 %v651_v43, 0.0  ;;  %v643_v50 = vadd.f32 %v642_v28, %v549_v48 }
 0x20f   :  { %v897_v30 = vpop.f32.mrf.mxu1 }
 0x210   :  { %v664_v33 = vadd.f32 %v897_v30, %v574_v26  ;;  %v680_v55 = vpack.c.bf16 %v673_v49, %v672_v53  ;;  %v671_v56 = vmax.f32 %v643_v50, 0.0 }
 0x211   :  { %v655_v32 = vpop.f32.mrf.mxu1 }
 0x212   :  { %v676_v38 = vmax.f32 %v664_v33, 0.0  ;;  %v656_v39 = vadd.f32 %v655_v32, %v564_v31  ;;  %v679_v58 = vpack.c.bf16 %v671_v56, %v670_v57 }
 0x213   :  { %v898_v34 = vpop.f32.mrf.mxu1 }
 0x214   :  { %v667_v35 = vadd.f32 %v898_v34, %v579_v24  ;;  %v674_v47 = vmax.f32 %v656_v39, 0.0 }
 0x215   :  { %v658_v37 = vpop.f32.mrf.mxu1 }
 0x216   :  { %v677_v40 = vmax.f32 %v667_v35, 0.0  ;;  %v659_v41 = vadd.f32 %v658_v37, %v569_v29 }
 0x218   :  { %v682_v44 = vpack.c.bf16 %v677_v40, %v676_v38  ;;  %v675_v45 = vmax.f32 %v659_v41, 0.0 }
 0x21a   :  { %900 = vmatpush3.bf16.msra.mxu0 %v682_v44  ;;  %v681_v51 = vpack.c.bf16 %v675_v45, %v674_v47 }
 0x21b   :  { %901 = vmatprep.subr.bf16.mxu0 %v986_v1 }
 0x21e   :  { %902 = vmatpush3.bf16.msra.mxu0 %v681_v51 }
 0x21f   :  { %903 = vmatprep.subr.bf16.mxu0 %v986_v1 }
 0x222   :  { %904 = vmatpush3.bf16.msra.mxu0 %v680_v55 }
 0x223   :  { %905 = vmatprep.subr.bf16.mxu0 %v986_v1 }
 0x226   :  { %906 = vmatpush3.bf16.msra.mxu0 %v679_v58 }
 0x229   :  { %908 = vmatmul.mubr.msk.bf16.vlgmr.msra.gmra.mxu0 %vm683_vm3, %v678_v59 }
 0x2e9   :  { %v721_v0 = vpop.f32.mrf.mxu0 }
 0x2ea   :  { %v727_v3 = vadd.f32 %v721_v0, %v1271_v6 }
 0x2eb   :  { %v909_v4 = vpop.f32.mrf.mxu0 }
 0x2ec   :  { %v738_v5 = vadd.f32 %v737_v2, %v727_v3 }
 0x2ed   :  { %v724_v8 = vpop.f32.mrf.mxu0 }
 0x2ee   :  { %v814_v1 = vmul.f32 -1.442695, %v738_v5 }
 0x2ef   :  { %v910_v10 = vpop.f32.mrf.mxu0 }
 0x2f0   :  { %932 = vpow2.f32 %v814_v1 }
 0x2fd   :  { %v933_v12 = vpop.eup %932 }
 0x2fe   :  { %v742_v13 = vadd.f32 1.0, %v933_v12 }
 0x300   :  { %934 = vrcp.f32 %v742_v13 }
 0x30d   :  { %v935_v15 = vpop.eup %934 }
 0x30e   :  { %746 = vst.msk [vmem:[#allocation8] sm:$0x1] %vm745_vm4, %v935_v15 }
 0x30f   :  { %971 = shalt.err (!%p968_p0)
}
 0x310   :  { %756 = dma.vmem_to_hbm [thread:$0]  %s754_s22, 16, %s1311_s12, [#allocation9]  }
 0x311   :  { %982 = dma.done.wait [#allocation9], 16  }
 0x312   :  { %983 = vsyncadd [#allocation9], 4294967280 }
 0x313   :  { %760 = vsyncpa [#allocation9], 1 }

</bundles_post_ra>
